<compile_context>
chip_gen: v5e
topology: v5e:2x2
jax: 0.10.0
libtpu: 0.0.40
codegen_flags: <defaults>
</compile_context>

<pallas_src>
import functools

import jax
import jax.numpy as jnp
from jax import lax
from jax.experimental import pallas as pl
from jax.experimental.pallas import tpu as pltpu

MSG_RELU = (True, True, True, False)    # Linear,ReLU,Linear,ReLU,Linear,ReLU,Linear
MLP2_RELU = (True, True, False)         # Linear,ReLU,Linear,ReLU,Linear
MLP2S_RELU = (True, True, False)        # Linear,ReLU,Linear,ReLU,Linear


def _mm(a, b):
    return jnp.dot(a, b, preferred_element_type=jnp.float32)


# ---------------------------------------------------------------------------
# Fused kernel: one-hot gather -> 2 merged message chains -> block-diag
# scatter-add (dot_general over edges) -> 2 update chains -> folded mlp_2s.
# Everything is VMEM resident; 6 input buffers total.
# ---------------------------------------------------------------------------
def _fused_forward_kernel(n, e_pad, idx_ref, xcat_ref, msgw_ref, updw_ref,
                          finw_ref, bias_ref, out_ref):
    E = e_pad

    idx = idx_ref[...]                       # [2E, 2] int32
    src2 = idx[:, 0:1]                       # [src ; src+n]  (padded edges = -1)
    tgt2 = idx[:, 1:2]                       # [tgt ; tgt+n]
    src_col = src2[0:E, :]                   # [E, 1] values in [0, n) or -1
    tgt_col = tgt2[0:E, :]

    xcat = xcat_ref[...]                     # [n, 2n]  = [x | x.T]
    bias = bias_ref[...]                     # [17, 20n] all biases, one per row

    # --- gather: one-hot matmuls on the MXU (padded edges -> zero rows) ------
    iota_en = lax.broadcasted_iota(jnp.int32, (E, n), 1)
    g_src = jnp.where(iota_en == src_col, 1.0, 0.0)          # [E, n]
    g_tgt = jnp.where(iota_en == tgt_col, 1.0, 0.0)
    gathered = _mm(g_src, xcat) * _mm(g_tgt, xcat)            # [E, 2n]
    feat = gathered[:, 0:n]                                   # x[src]  * x[tgt]
    feat_t = gathered[:, n:2 * n]                             # xT[src] * xT[tgt]

    # --- merged message chains (fwd|bwd concatenated along N) ---------------
    msg_dims = ((n, 2 * n), (2 * n, 20 * n), (20 * n, 2 * n), (2 * n, 2 * n))

    def msg_chain(h, row0, brow0):
        r = row0
        for li, (kin, kout) in enumerate(msg_dims):
            w = msgw_ref[r:r + kin, 0:kout]
            b = bias[brow0 + li:brow0 + li + 1, 0:kout]
            h = _mm(h, w) + b
            if MSG_RELU[li]:
                h = jnp.maximum(h, 0.0)
            r += kin
        return h

    mT = msg_chain(feat, 0, 0)                # [E, 2n] = [m1 | m3] (targets MLPs)
    mS = msg_chain(feat_t, 25 * n, 4)         # [E, 2n] = [m2 | m4] (sources MLPs)

    # rows 0..E carry chain T (m1|m3), rows E..2E carry chain S (m2|m4)
    m_all = jnp.concatenate([mT, mS], axis=0)                 # [2E, 2n]

    # --- scatter-add: block-diag one-hot, contract over the edge axis --------
    # s[e, v]  (e <  E): 1 iff tgt[e]==v       -> routes m1 rows to nodes 0..n
    # s[e, n+v](e >= E): 1 iff tgt[e-E]==v     -> routes m2 rows to nodes n..2n
    # padded edges have index -1 -> all-zero rows, so garbage messages vanish.
    iota_e2 = lax.broadcasted_iota(jnp.int32, (2 * E, 2 * n), 1)
    s_tgt = jnp.where(iota_e2 == tgt2, 1.0, 0.0)              # [2E, 2n]
    s_src = jnp.where(iota_e2 == src2, 1.0, 0.0)
    dn = (((0,), (0,)), ((), ()))
    agg12 = lax.dot_general(s_tgt, m_all[:, 0:n], dn,
                            preferred_element_type=jnp.float32)    # [2n, n] = [agg1; agg2]
    agg34 = lax.dot_general(s_src, m_all[:, n:2 * n], dn,
                            preferred_element_type=jnp.float32)    # [2n, n] = [agg3; agg4]

    # --- update MLPs: fwd_mlp2 / bwd_mlp2 each run once on [2n, n] -----------
    upd_dims = ((n, 10 * n), (10 * n, n), (n, n))

    def upd_chain(h, row0, brow0):
        r = row0
        for li, (kin, kout) in enumerate(upd_dims):
            w = updw_ref[r:r + kin, 0:kout]
            b = bias[brow0 + li:brow0 + li + 1, 0:kout]
            h = _mm(h, w) + b
            if MLP2_RELU[li]:
                h = jnp.maximum(h, 0.0)
            r += kin
        return h

    o12 = upd_chain(agg12, 0, 8)              # [2n, n] = [output_1 ; output_2]
    o34 = upd_chain(agg34, 12 * n, 11)        # [2n, n] = [output_3 ; output_4]

    # --- mlp_2s: concat([o1..o4], axis=1) folded into layer 1 split-weight sum
    h = (_mm(o12[0:n, :], finw_ref[0:n, 0:10 * n])
         + _mm(o12[n:2 * n, :], finw_ref[n:2 * n, 0:10 * n])
         + _mm(o34[0:n, :], finw_ref[2 * n:3 * n, 0:10 * n])
         + _mm(o34[n:2 * n, :], finw_ref[3 * n:4 * n, 0:10 * n])
         + bias[14:15, 0:10 * n])
    h = jnp.maximum(h, 0.0)
    h = jnp.maximum(_mm(h, finw_ref[4 * n:14 * n, 0:n]) + bias[15:16, 0:n], 0.0)
    out_ref[...] = _mm(h, finw_ref[14 * n:15 * n, 0:1]) + bias[16:17, 0:1]


# ---------------------------------------------------------------------------
# Wrapper: merge fwd/bwd weights, pack everything into 6 VMEM buffers.
# ---------------------------------------------------------------------------
def _lane_pad(w, width):
    return jnp.pad(w, ((0, 0), (0, width - w.shape[1])))


def _block_diag(a, b):
    ra, ca = a.shape
    rb, cb = b.shape
    top = jnp.concatenate([a, jnp.zeros((ra, cb), a.dtype)], axis=1)
    bot = jnp.concatenate([jnp.zeros((rb, ca), b.dtype), b], axis=1)
    return jnp.concatenate([top, bot], axis=0)


def _pack_params(params, n):
    wide = 20 * n

    def merge_chain(pf, pb):
        ws, bs = [], []
        for li, ((wf, bf), (wb, bb)) in enumerate(zip(pf, pb)):
            w = jnp.concatenate([wf, wb], axis=1) if li == 0 else _block_diag(wf, wb)
            ws.append(w)
            bs.append(jnp.concatenate([bf, bb], axis=0))
        return ws, bs

    wT, bT = merge_chain(params["fwd_targets"], params["bwd_targets"])
    wS, bS = merge_chain(params["fwd_sources"], params["bwd_sources"])
    msg_w = jnp.concatenate([_lane_pad(w, wide) for w in wT + wS], axis=0)     # [50n, 20n]

    upd_w = jnp.concatenate(
        [_lane_pad(w, 10 * n) for w, _ in params["fwd_mlp2"] + params["bwd_mlp2"]],
        axis=0)                                                                 # [24n, 10n]
    fin_w = jnp.concatenate(
        [_lane_pad(w, 10 * n) for w, _ in params["mlp_2s"]], axis=0)            # [15n, 10n]

    bias_rows = (bT + bS
                 + [b for _, b in params["fwd_mlp2"]]
                 + [b for _, b in params["bwd_mlp2"]]
                 + [b for _, b in params["mlp_2s"]])
    bias = jnp.concatenate([_lane_pad(b.reshape(1, -1), wide) for b in bias_rows],
                           axis=0)                                              # [17, 20n]
    return msg_w, upd_w, fin_w, bias


def outer_simplicial_2finder_forward(params, edge_index, x):
    n_nodes, n_feat = x.shape
    assert n_nodes == n_feat, "W0 connectivity matrix must be square"
    n = n_nodes

    src = edge_index[0].astype(jnp.int32)
    tgt = edge_index[1].astype(jnp.int32)
    e = src.shape[0]
    e_pad = max(8, ((e + 7) // 8) * 8)          # sublane granularity only
    # Pad with -1 so padded edges match no node (zero one-hot rows/columns).
    src_p = jnp.pad(src, (0, e_pad - e), constant_values=-1)
    tgt_p = jnp.pad(tgt, (0, e_pad - e), constant_values=-1)
    src2 = jnp.concatenate([src_p, jnp.where(src_p >= 0, src_p + n, -1)])
    tgt2 = jnp.concatenate([tgt_p, jnp.where(tgt_p >= 0, tgt_p + n, -1)])
    idx = jnp.stack([src2, tgt2], axis=1)       # [2*e_pad, 2] int32

    x32 = x.astype(jnp.float32)
    x_cat = jnp.concatenate([x32, x32.T], axis=1)            # [n, 2n]

    msg_w, upd_w, fin_w, bias = _pack_params(params, n)

    kernel = functools.partial(_fused_forward_kernel, n, e_pad)
    return pl.pallas_call(
        kernel,
        out_shape=jax.ShapeDtypeStruct((n, 1), jnp.float32),
        in_specs=[pl.BlockSpec(memory_space=pltpu.MemorySpace.VMEM)] * 6,
        out_specs=pl.BlockSpec(memory_space=pltpu.MemorySpace.VMEM),
        compiler_params=pltpu.CompilerParams(vmem_limit_bytes=32 * 1024 * 1024),
    )(idx, x_cat, msg_w, upd_w, fin_w, bias)


# ---------------------------------------------------------------------------
# Deterministic parameter init (kaiming-normal weights, uniform biases),
# stored as (W^T [in, out], b [out]) for row-major x @ W + b.
# ---------------------------------------------------------------------------
def _init_linear(key, fan_in, fan_out):
    kw, kb = jax.random.split(key)
    w = jax.random.normal(kw, (fan_in, fan_out), jnp.float32) * jnp.sqrt(2.0 / fan_in)
    bound = 1.0 / jnp.sqrt(float(fan_in))
    b = jax.random.uniform(kb, (fan_out,), jnp.float32, -bound, bound)
    return w, b


def _init_mlp(key, dims):
    keys = jax.random.split(key, len(dims) - 1)
    return [_init_linear(k, dims[i], dims[i + 1]) for i, k in enumerate(keys)]


def init_params(key, n):
    keys = jax.random.split(key, 7)
    msg_dims = (n, n, 10 * n, n, n)
    mlp2_dims = (n, 10 * n, n, n)
    return {
        "fwd_targets": _init_mlp(keys[0], msg_dims),
        "fwd_sources": _init_mlp(keys[1], msg_dims),
        "fwd_mlp2": _init_mlp(keys[2], mlp2_dims),
        "bwd_targets": _init_mlp(keys[3], msg_dims),
        "bwd_sources": _init_mlp(keys[4], msg_dims),
        "bwd_mlp2": _init_mlp(keys[5], mlp2_dims),
        "mlp_2s": _init_mlp(keys[6], (4 * n, 10 * n, n, 1)),
    }


# ---------------------------------------------------------------------------
# Pure-JAX reference (mirrors PyG propagate semantics) for a sanity check.
# ---------------------------------------------------------------------------
def _mlp_ref(x, layers, relu_flags):
    h = x
    for (w, b), r in zip(layers, relu_flags):
        h = h @ w + b
        if r:
            h = jnp.maximum(h, 0.0)
    return h


def reference_forward(params, edge_index, x):
    src, tgt = edge_index[0], edge_index[1]
    n_nodes, n = x.shape
    x_t = x.T
    feat = x[src] * x[tgt]
    feat_t = x_t[src] * x_t[tgt]

    def prop(feat_e, mlp_msg, mlp2, agg_idx):
        msgs = _mlp_ref(feat_e, mlp_msg, MSG_RELU)
        agg = jnp.zeros((n_nodes, n), jnp.float32).at[agg_idx].add(msgs)
        return _mlp_ref(agg, mlp2, MLP2_RELU)

    out1 = prop(feat, params["fwd_targets"], params["fwd_mlp2"], tgt)
    out2 = prop(feat_t, params["fwd_sources"], params["fwd_mlp2"], tgt)
    out3 = prop(feat, params["bwd_targets"], params["bwd_mlp2"], src)
    out4 = prop(feat_t, params["bwd_sources"], params["bwd_mlp2"], src)
    concat = jnp.concatenate([out1, out2, out3, out4], axis=1)
    return _mlp_ref(concat, params["mlp_2s"], MLP2S_RELU)


if __name__ == "__main__":
    n_neurons = 16          # params.n_neurons; x is the square W0 matrix
    num_edges = 48

    key = jax.random.PRNGKey(0)
    k_x, k_e, k_p = jax.random.split(key, 3)
    x = jax.random.normal(k_x, (n_neurons, n_neurons), jnp.float32) * 0.3

    k_s, k_t = jax.random.split(k_e)
    src = jax.random.randint(k_s, (num_edges,), 0, n_neurons)
    tgt = jax.random.randint(k_t, (num_edges,), 0, n_neurons)
    edge_index = jnp.stack([src, tgt], axis=0)        # [2, E]

    params = init_params(k_p, n_neurons)

    fwd = jax.jit(outer_simplicial_2finder_forward)
    out = jax.block_until_ready(fwd(params, edge_index, x))
    assert out.shape == (n_neurons, 1), out.shape

    ref = reference_forward(params, edge_index, x)
    rel_err = float(jnp.max(jnp.abs(out - ref)) / (jnp.max(jnp.abs(ref)) + 1e-6))
    # The one-hot gather/scatter-as-matmul path is exact; the tolerance covers
    # default-precision f32 matmuls (bf16 MXU passes) across ~8 chained Linear
    # layers between the Mosaic kernel and the XLA reference.
    assert rel_err < 2e-2, f"mismatch vs reference: rel_err={rel_err}"

    print("KERNEL_OK")
</pallas_src>

<mosaic_0001>
module attributes {stable_mosaic.version = 11 : i64} {
  func.func @_fused_forward_kernel(%arg0: memref<96x2xi32, #tpu.memory_space<vmem>>, %arg1: memref<16x32xf32, #tpu.memory_space<vmem>>, %arg2: memref<800x320xf32, #tpu.memory_space<vmem>>, %arg3: memref<384x160xf32, #tpu.memory_space<vmem>>, %arg4: memref<240x160xf32, #tpu.memory_space<vmem>>, %arg5: memref<17x320xf32, #tpu.memory_space<vmem>>, %arg6: memref<16x1xf32, #tpu.memory_space<vmem>>) attributes {dimension_semantics = [], scalar_prefetch = 0 : i64, scratch_operands = 0 : i64, tpu.core_type = #tpu.core_type<tc>} {
    %c0 = arith.constant 0 : index
    %c0_0 = arith.constant 0 : index
    %0 = vector.load %arg0[%c0, %c0_0] : memref<96x2xi32, #tpu.memory_space<vmem>>, vector<96x2xi32>
    %1 = vector.extract_strided_slice %0 {offsets = [0, 0], sizes = [96, 1], strides = [1, 1]} : vector<96x2xi32> to vector<96x1xi32>
    %2 = vector.extract_strided_slice %0 {offsets = [0, 1], sizes = [96, 1], strides = [1, 1]} : vector<96x2xi32> to vector<96x1xi32>
    %3 = vector.extract_strided_slice %1 {offsets = [0, 0], sizes = [48, 1], strides = [1, 1]} : vector<96x1xi32> to vector<48x1xi32>
    %4 = vector.extract_strided_slice %2 {offsets = [0, 0], sizes = [48, 1], strides = [1, 1]} : vector<96x1xi32> to vector<48x1xi32>
    %c0_1 = arith.constant 0 : index
    %c0_2 = arith.constant 0 : index
    %5 = vector.load %arg1[%c0_1, %c0_2] : memref<16x32xf32, #tpu.memory_space<vmem>>, vector<16x32xf32>
    %c0_3 = arith.constant 0 : index
    %c0_4 = arith.constant 0 : index
    %6 = vector.load %arg5[%c0_3, %c0_4] : memref<17x320xf32, #tpu.memory_space<vmem>>, vector<17x320xf32>
    %7 = tpu.iota {dimensions = array<i32: 1>} : vector<48x16xi32>
    %8 = vector.broadcast %3 : vector<48x1xi32> to vector<48x16xi32>
    %9 = arith.cmpi eq, %7, %8 : vector<48x16xi32>
    %cst = arith.constant 1.000000e+00 : f32
    %cst_5 = arith.constant 0.000000e+00 : f32
    %10 = vector.broadcast %cst : f32 to vector<48x16xf32>
    %11 = vector.broadcast %cst_5 : f32 to vector<48x16xf32>
    %12 = arith.select %9, %10, %11 : vector<48x16xi1>, vector<48x16xf32>
    %13 = vector.broadcast %4 : vector<48x1xi32> to vector<48x16xi32>
    %14 = arith.cmpi eq, %7, %13 : vector<48x16xi32>
    %cst_6 = arith.constant 1.000000e+00 : f32
    %cst_7 = arith.constant 0.000000e+00 : f32
    %15 = vector.broadcast %cst_6 : f32 to vector<48x16xf32>
    %16 = vector.broadcast %cst_7 : f32 to vector<48x16xf32>
    %17 = arith.select %14, %15, %16 : vector<48x16xi1>, vector<48x16xf32>
    %cst_8 = arith.constant dense<0.000000e+00> : vector<48x32xf32>
    %18 = tpu.matmul %12, %5, %cst_8 {dimension_numbers = #tpu.dot_dimension_numbers<[1], [0], [0], [1], [0, 0, 1, 1], [], []>} : vector<48x16xf32>, vector<16x32xf32>, vector<48x32xf32> -> vector<48x32xf32>
    %cst_9 = arith.constant dense<0.000000e+00> : vector<48x32xf32>
    %19 = tpu.matmul %17, %5, %cst_9 {dimension_numbers = #tpu.dot_dimension_numbers<[1], [0], [0], [1], [0, 0, 1, 1], [], []>} : vector<48x16xf32>, vector<16x32xf32>, vector<48x32xf32> -> vector<48x32xf32>
    %20 = arith.mulf %18, %19 : vector<48x32xf32>
    %21 = vector.extract_strided_slice %20 {offsets = [0, 0], sizes = [48, 16], strides = [1, 1]} : vector<48x32xf32> to vector<48x16xf32>
    %22 = vector.extract_strided_slice %20 {offsets = [0, 16], sizes = [48, 16], strides = [1, 1]} : vector<48x32xf32> to vector<48x16xf32>
    %c0_10 = arith.constant 0 : index
    %c0_11 = arith.constant 0 : index
    %23 = vector.load %arg2[%c0_10, %c0_11] : memref<800x320xf32, #tpu.memory_space<vmem>>, vector<16x32xf32>
    %24 = vector.extract_strided_slice %6 {offsets = [0, 0], sizes = [1, 32], strides = [1, 1]} : vector<17x320xf32> to vector<1x32xf32>
    %cst_12 = arith.constant dense<0.000000e+00> : vector<48x32xf32>
    %25 = tpu.matmul %21, %23, %cst_12 {dimension_numbers = #tpu.dot_dimension_numbers<[1], [0], [0], [1], [0, 0, 1, 1], [], []>} : vector<48x16xf32>, vector<16x32xf32>, vector<48x32xf32> -> vector<48x32xf32>
    %26 = vector.broadcast %24 : vector<1x32xf32> to vector<48x32xf32>
    %27 = arith.addf %25, %26 : vector<48x32xf32>
    %cst_13 = arith.constant 0.000000e+00 : f32
    %28 = vector.broadcast %cst_13 : f32 to vector<48x32xf32>
    %29 = arith.maximumf %27, %28 : vector<48x32xf32>
    %c16 = arith.constant 16 : index
    %c0_14 = arith.constant 0 : index
    %30 = vector.load %arg2[%c16, %c0_14] : memref<800x320xf32, #tpu.memory_space<vmem>>, vector<32x320xf32>
    %31 = vector.extract_strided_slice %6 {offsets = [1, 0], sizes = [1, 320], strides = [1, 1]} : vector<17x320xf32> to vector<1x320xf32>
    %cst_15 = arith.constant dense<0.000000e+00> : vector<48x320xf32>
    %32 = tpu.matmul %29, %30, %cst_15 {dimension_numbers = #tpu.dot_dimension_numbers<[1], [0], [0], [1], [0, 0, 1, 1], [], []>} : vector<48x32xf32>, vector<32x320xf32>, vector<48x320xf32> -> vector<48x320xf32>
    %33 = vector.broadcast %31 : vector<1x320xf32> to vector<48x320xf32>
    %34 = arith.addf %32, %33 : vector<48x320xf32>
    %cst_16 = arith.constant 0.000000e+00 : f32
    %35 = vector.broadcast %cst_16 : f32 to vector<48x320xf32>
    %36 = arith.maximumf %34, %35 : vector<48x320xf32>
    %c48 = arith.constant 48 : index
    %c0_17 = arith.constant 0 : index
    %37 = vector.load %arg2[%c48, %c0_17] : memref<800x320xf32, #tpu.memory_space<vmem>>, vector<320x32xf32>
    %38 = vector.extract_strided_slice %6 {offsets = [2, 0], sizes = [1, 32], strides = [1, 1]} : vector<17x320xf32> to vector<1x32xf32>
    %cst_18 = arith.constant dense<0.000000e+00> : vector<48x32xf32>
    %39 = tpu.matmul %36, %37, %cst_18 {dimension_numbers = #tpu.dot_dimension_numbers<[1], [0], [0], [1], [0, 0, 1, 1], [], []>} : vector<48x320xf32>, vector<320x32xf32>, vector<48x32xf32> -> vector<48x32xf32>
    %40 = vector.broadcast %38 : vector<1x32xf32> to vector<48x32xf32>
    %41 = arith.addf %39, %40 : vector<48x32xf32>
    %cst_19 = arith.constant 0.000000e+00 : f32
    %42 = vector.broadcast %cst_19 : f32 to vector<48x32xf32>
    %43 = arith.maximumf %41, %42 : vector<48x32xf32>
    %c368 = arith.constant 368 : index
    %c0_20 = arith.constant 0 : index
    %44 = vector.load %arg2[%c368, %c0_20] : memref<800x320xf32, #tpu.memory_space<vmem>>, vector<32x32xf32>
    %45 = vector.extract_strided_slice %6 {offsets = [3, 0], sizes = [1, 32], strides = [1, 1]} : vector<17x320xf32> to vector<1x32xf32>
    %cst_21 = arith.constant dense<0.000000e+00> : vector<48x32xf32>
    %46 = tpu.matmul %43, %44, %cst_21 {dimension_numbers = #tpu.dot_dimension_numbers<[1], [0], [0], [1], [0, 0, 1, 1], [], []>} : vector<48x32xf32>, vector<32x32xf32>, vector<48x32xf32> -> vector<48x32xf32>
    %47 = vector.broadcast %45 : vector<1x32xf32> to vector<48x32xf32>
    %48 = arith.addf %46, %47 : vector<48x32xf32>
    %c400 = arith.constant 400 : index
    %c0_22 = arith.constant 0 : index
    %49 = vector.load %arg2[%c400, %c0_22] : memref<800x320xf32, #tpu.memory_space<vmem>>, vector<16x32xf32>
    %50 = vector.extract_strided_slice %6 {offsets = [4, 0], sizes = [1, 32], strides = [1, 1]} : vector<17x320xf32> to vector<1x32xf32>
    %cst_23 = arith.constant dense<0.000000e+00> : vector<48x32xf32>
    %51 = tpu.matmul %22, %49, %cst_23 {dimension_numbers = #tpu.dot_dimension_numbers<[1], [0], [0], [1], [0, 0, 1, 1], [], []>} : vector<48x16xf32>, vector<16x32xf32>, vector<48x32xf32> -> vector<48x32xf32>
    %52 = vector.broadcast %50 : vector<1x32xf32> to vector<48x32xf32>
    %53 = arith.addf %51, %52 : vector<48x32xf32>
    %cst_24 = arith.constant 0.000000e+00 : f32
    %54 = vector.broadcast %cst_24 : f32 to vector<48x32xf32>
    %55 = arith.maximumf %53, %54 : vector<48x32xf32>
    %c416 = arith.constant 416 : index
    %c0_25 = arith.constant 0 : index
    %56 = vector.load %arg2[%c416, %c0_25] : memref<800x320xf32, #tpu.memory_space<vmem>>, vector<32x320xf32>
    %57 = vector.extract_strided_slice %6 {offsets = [5, 0], sizes = [1, 320], strides = [1, 1]} : vector<17x320xf32> to vector<1x320xf32>
    %cst_26 = arith.constant dense<0.000000e+00> : vector<48x320xf32>
    %58 = tpu.matmul %55, %56, %cst_26 {dimension_numbers = #tpu.dot_dimension_numbers<[1], [0], [0], [1], [0, 0, 1, 1], [], []>} : vector<48x32xf32>, vector<32x320xf32>, vector<48x320xf32> -> vector<48x320xf32>
    %59 = vector.broadcast %57 : vector<1x320xf32> to vector<48x320xf32>
    %60 = arith.addf %58, %59 : vector<48x320xf32>
    %cst_27 = arith.constant 0.000000e+00 : f32
    %61 = vector.broadcast %cst_27 : f32 to vector<48x320xf32>
    %62 = arith.maximumf %60, %61 : vector<48x320xf32>
    %c448 = arith.constant 448 : index
    %c0_28 = arith.constant 0 : index
    %63 = vector.load %arg2[%c448, %c0_28] : memref<800x320xf32, #tpu.memory_space<vmem>>, vector<320x32xf32>
    %64 = vector.extract_strided_slice %6 {offsets = [6, 0], sizes = [1, 32], strides = [1, 1]} : vector<17x320xf32> to vector<1x32xf32>
    %cst_29 = arith.constant dense<0.000000e+00> : vector<48x32xf32>
    %65 = tpu.matmul %62, %63, %cst_29 {dimension_numbers = #tpu.dot_dimension_numbers<[1], [0], [0], [1], [0, 0, 1, 1], [], []>} : vector<48x320xf32>, vector<320x32xf32>, vector<48x32xf32> -> vector<48x32xf32>
    %66 = vector.broadcast %64 : vector<1x32xf32> to vector<48x32xf32>
    %67 = arith.addf %65, %66 : vector<48x32xf32>
    %cst_30 = arith.constant 0.000000e+00 : f32
    %68 = vector.broadcast %cst_30 : f32 to vector<48x32xf32>
    %69 = arith.maximumf %67, %68 : vector<48x32xf32>
    %c768 = arith.constant 768 : index
    %c0_31 = arith.constant 0 : index
    %70 = vector.load %arg2[%c768, %c0_31] : memref<800x320xf32, #tpu.memory_space<vmem>>, vector<32x32xf32>
    %71 = vector.extract_strided_slice %6 {offsets = [7, 0], sizes = [1, 32], strides = [1, 1]} : vector<17x320xf32> to vector<1x32xf32>
    %cst_32 = arith.constant dense<0.000000e+00> : vector<48x32xf32>
    %72 = tpu.matmul %69, %70, %cst_32 {dimension_numbers = #tpu.dot_dimension_numbers<[1], [0], [0], [1], [0, 0, 1, 1], [], []>} : vector<48x32xf32>, vector<32x32xf32>, vector<48x32xf32> -> vector<48x32xf32>
    %73 = vector.broadcast %71 : vector<1x32xf32> to vector<48x32xf32>
    %74 = arith.addf %72, %73 : vector<48x32xf32>
    %75 = tpu.concatenate %48, %74 in 0 : vector<48x32xf32>, vector<48x32xf32> -> vector<96x32xf32>
    %76 = tpu.iota {dimensions = array<i32: 1>} : vector<96x32xi32>
    %77 = vector.broadcast %2 : vector<96x1xi32> to vector<96x32xi32>
    %78 = arith.cmpi eq, %76, %77 : vector<96x32xi32>
    %cst_33 = arith.constant 1.000000e+00 : f32
    %cst_34 = arith.constant 0.000000e+00 : f32
    %79 = vector.broadcast %cst_33 : f32 to vector<96x32xf32>
    %80 = vector.broadcast %cst_34 : f32 to vector<96x32xf32>
    %81 = arith.select %78, %79, %80 : vector<96x32xi1>, vector<96x32xf32>
    %82 = vector.broadcast %1 : vector<96x1xi32> to vector<96x32xi32>
    %83 = arith.cmpi eq, %76, %82 : vector<96x32xi32>
    %cst_35 = arith.constant 1.000000e+00 : f32
    %cst_36 = arith.constant 0.000000e+00 : f32
    %84 = vector.broadcast %cst_35 : f32 to vector<96x32xf32>
    %85 = vector.broadcast %cst_36 : f32 to vector<96x32xf32>
    %86 = arith.select %83, %84, %85 : vector<96x32xi1>, vector<96x32xf32>
    %87 = vector.extract_strided_slice %75 {offsets = [0, 0], sizes = [96, 16], strides = [1, 1]} : vector<96x32xf32> to vector<96x16xf32>
    %cst_37 = arith.constant dense<0.000000e+00> : vector<32x16xf32>
    %88 = tpu.matmul %81, %87, %cst_37 {dimension_numbers = #tpu.dot_dimension_numbers<[0], [0], [1], [1], [0, 1, 1, 1], [], []>} : vector<96x32xf32>, vector<96x16xf32>, vector<32x16xf32> -> vector<32x16xf32>
    %89 = vector.extract_strided_slice %75 {offsets = [0, 16], sizes = [96, 16], strides = [1, 1]} : vector<96x32xf32> to vector<96x16xf32>
    %cst_38 = arith.constant dense<0.000000e+00> : vector<32x16xf32>
    %90 = tpu.matmul %86, %89, %cst_38 {dimension_numbers = #tpu.dot_dimension_numbers<[0], [0], [1], [1], [0, 1, 1, 1], [], []>} : vector<96x32xf32>, vector<96x16xf32>, vector<32x16xf32> -> vector<32x16xf32>
    %c0_39 = arith.constant 0 : index
    %c0_40 = arith.constant 0 : index
    %91 = vector.load %arg3[%c0_39, %c0_40] : memref<384x160xf32, #tpu.memory_space<vmem>>, vector<16x160xf32>
    %92 = vector.extract_strided_slice %6 {offsets = [8, 0], sizes = [1, 160], strides = [1, 1]} : vector<17x320xf32> to vector<1x160xf32>
    %cst_41 = arith.constant dense<0.000000e+00> : vector<32x160xf32>
    %93 = tpu.matmul %88, %91, %cst_41 {dimension_numbers = #tpu.dot_dimension_numbers<[1], [0], [0], [1], [0, 0, 1, 1], [], []>} : vector<32x16xf32>, vector<16x160xf32>, vector<32x160xf32> -> vector<32x160xf32>
    %94 = vector.broadcast %92 : vector<1x160xf32> to vector<32x160xf32>
    %95 = arith.addf %93, %94 : vector<32x160xf32>
    %cst_42 = arith.constant 0.000000e+00 : f32
    %96 = vector.broadcast %cst_42 : f32 to vector<32x160xf32>
    %97 = arith.maximumf %95, %96 : vector<32x160xf32>
    %c16_43 = arith.constant 16 : index
    %c0_44 = arith.constant 0 : index
    %98 = vector.load %arg3[%c16_43, %c0_44] : memref<384x160xf32, #tpu.memory_space<vmem>>, vector<160x16xf32>
    %99 = vector.extract_strided_slice %6 {offsets = [9, 0], sizes = [1, 16], strides = [1, 1]} : vector<17x320xf32> to vector<1x16xf32>
    %cst_45 = arith.constant dense<0.000000e+00> : vector<32x16xf32>
    %100 = tpu.matmul %97, %98, %cst_45 {dimension_numbers = #tpu.dot_dimension_numbers<[1], [0], [0], [1], [0, 0, 1, 1], [], []>} : vector<32x160xf32>, vector<160x16xf32>, vector<32x16xf32> -> vector<32x16xf32>
    %101 = vector.broadcast %99 : vector<1x16xf32> to vector<32x16xf32>
    %102 = arith.addf %100, %101 : vector<32x16xf32>
    %cst_46 = arith.constant 0.000000e+00 : f32
    %103 = vector.broadcast %cst_46 : f32 to vector<32x16xf32>
    %104 = arith.maximumf %102, %103 : vector<32x16xf32>
    %c176 = arith.constant 176 : index
    %c0_47 = arith.constant 0 : index
    %105 = vector.load %arg3[%c176, %c0_47] : memref<384x160xf32, #tpu.memory_space<vmem>>, vector<16x16xf32>
    %106 = vector.extract_strided_slice %6 {offsets = [10, 0], sizes = [1, 16], strides = [1, 1]} : vector<17x320xf32> to vector<1x16xf32>
    %cst_48 = arith.constant dense<0.000000e+00> : vector<32x16xf32>
    %107 = tpu.matmul %104, %105, %cst_48 {dimension_numbers = #tpu.dot_dimension_numbers<[1], [0], [0], [1], [0, 0, 1, 1], [], []>} : vector<32x16xf32>, vector<16x16xf32>, vector<32x16xf32> -> vector<32x16xf32>
    %108 = vector.broadcast %106 : vector<1x16xf32> to vector<32x16xf32>
    %109 = arith.addf %107, %108 : vector<32x16xf32>
    %c192 = arith.constant 192 : index
    %c0_49 = arith.constant 0 : index
    %110 = vector.load %arg3[%c192, %c0_49] : memref<384x160xf32, #tpu.memory_space<vmem>>, vector<16x160xf32>
    %111 = vector.extract_strided_slice %6 {offsets = [11, 0], sizes = [1, 160], strides = [1, 1]} : vector<17x320xf32> to vector<1x160xf32>
    %cst_50 = arith.constant dense<0.000000e+00> : vector<32x160xf32>
    %112 = tpu.matmul %90, %110, %cst_50 {dimension_numbers = #tpu.dot_dimension_numbers<[1], [0], [0], [1], [0, 0, 1, 1], [], []>} : vector<32x16xf32>, vector<16x160xf32>, vector<32x160xf32> -> vector<32x160xf32>
    %113 = vector.broadcast %111 : vector<1x160xf32> to vector<32x160xf32>
    %114 = arith.addf %112, %113 : vector<32x160xf32>
    %cst_51 = arith.constant 0.000000e+00 : f32
    %115 = vector.broadcast %cst_51 : f32 to vector<32x160xf32>
    %116 = arith.maximumf %114, %115 : vector<32x160xf32>
    %c208 = arith.constant 208 : index
    %c0_52 = arith.constant 0 : index
    %117 = vector.load %arg3[%c208, %c0_52] : memref<384x160xf32, #tpu.memory_space<vmem>>, vector<160x16xf32>
    %118 = vector.extract_strided_slice %6 {offsets = [12, 0], sizes = [1, 16], strides = [1, 1]} : vector<17x320xf32> to vector<1x16xf32>
    %cst_53 = arith.constant dense<0.000000e+00> : vector<32x16xf32>
    %119 = tpu.matmul %116, %117, %cst_53 {dimension_numbers = #tpu.dot_dimension_numbers<[1], [0], [0], [1], [0, 0, 1, 1], [], []>} : vector<32x160xf32>, vector<160x16xf32>, vector<32x16xf32> -> vector<32x16xf32>
    %120 = vector.broadcast %118 : vector<1x16xf32> to vector<32x16xf32>
    %121 = arith.addf %119, %120 : vector<32x16xf32>
    %cst_54 = arith.constant 0.000000e+00 : f32
    %122 = vector.broadcast %cst_54 : f32 to vector<32x16xf32>
    %123 = arith.maximumf %121, %122 : vector<32x16xf32>
    %c368_55 = arith.constant 368 : index
    %c0_56 = arith.constant 0 : index
    %124 = vector.load %arg3[%c368_55, %c0_56] : memref<384x160xf32, #tpu.memory_space<vmem>>, vector<16x16xf32>
    %125 = vector.extract_strided_slice %6 {offsets = [13, 0], sizes = [1, 16], strides = [1, 1]} : vector<17x320xf32> to vector<1x16xf32>
    %cst_57 = arith.constant dense<0.000000e+00> : vector<32x16xf32>
    %126 = tpu.matmul %123, %124, %cst_57 {dimension_numbers = #tpu.dot_dimension_numbers<[1], [0], [0], [1], [0, 0, 1, 1], [], []>} : vector<32x16xf32>, vector<16x16xf32>, vector<32x16xf32> -> vector<32x16xf32>
    %127 = vector.broadcast %125 : vector<1x16xf32> to vector<32x16xf32>
    %128 = arith.addf %126, %127 : vector<32x16xf32>
    %129 = vector.extract_strided_slice %109 {offsets = [0, 0], sizes = [16, 16], strides = [1, 1]} : vector<32x16xf32> to vector<16x16xf32>
    %c0_58 = arith.constant 0 : index
    %c0_59 = arith.constant 0 : index
    %130 = vector.load %arg4[%c0_58, %c0_59] : memref<240x160xf32, #tpu.memory_space<vmem>>, vector<16x160xf32>
    %cst_60 = arith.constant dense<0.000000e+00> : vector<16x160xf32>
    %131 = tpu.matmul %129, %130, %cst_60 {dimension_numbers = #tpu.dot_dimension_numbers<[1], [0], [0], [1], [0, 0, 1, 1], [], []>} : vector<16x16xf32>, vector<16x160xf32>, vector<16x160xf32> -> vector<16x160xf32>
    %132 = vector.extract_strided_slice %109 {offsets = [16, 0], sizes = [16, 16], strides = [1, 1]} : vector<32x16xf32> to vector<16x16xf32>
    %c16_61 = arith.constant 16 : index
    %c0_62 = arith.constant 0 : index
    %133 = vector.load %arg4[%c16_61, %c0_62] : memref<240x160xf32, #tpu.memory_space<vmem>>, vector<16x160xf32>
    %cst_63 = arith.constant dense<0.000000e+00> : vector<16x160xf32>
    %134 = tpu.matmul %132, %133, %cst_63 {dimension_numbers = #tpu.dot_dimension_numbers<[1], [0], [0], [1], [0, 0, 1, 1], [], []>} : vector<16x16xf32>, vector<16x160xf32>, vector<16x160xf32> -> vector<16x160xf32>
    %135 = arith.addf %131, %134 : vector<16x160xf32>
    %136 = vector.extract_strided_slice %128 {offsets = [0, 0], sizes = [16, 16], strides = [1, 1]} : vector<32x16xf32> to vector<16x16xf32>
    %c32 = arith.constant 32 : index
    %c0_64 = arith.constant 0 : index
    %137 = vector.load %arg4[%c32, %c0_64] : memref<240x160xf32, #tpu.memory_space<vmem>>, vector<16x160xf32>
    %cst_65 = arith.constant dense<0.000000e+00> : vector<16x160xf32>
    %138 = tpu.matmul %136, %137, %cst_65 {dimension_numbers = #tpu.dot_dimension_numbers<[1], [0], [0], [1], [0, 0, 1, 1], [], []>} : vector<16x16xf32>, vector<16x160xf32>, vector<16x160xf32> -> vector<16x160xf32>
    %139 = arith.addf %135, %138 : vector<16x160xf32>
    %140 = vector.extract_strided_slice %128 {offsets = [16, 0], sizes = [16, 16], strides = [1, 1]} : vector<32x16xf32> to vector<16x16xf32>
    %c48_66 = arith.constant 48 : index
    %c0_67 = arith.constant 0 : index
    %141 = vector.load %arg4[%c48_66, %c0_67] : memref<240x160xf32, #tpu.memory_space<vmem>>, vector<16x160xf32>
    %cst_68 = arith.constant dense<0.000000e+00> : vector<16x160xf32>
    %142 = tpu.matmul %140, %141, %cst_68 {dimension_numbers = #tpu.dot_dimension_numbers<[1], [0], [0], [1], [0, 0, 1, 1], [], []>} : vector<16x16xf32>, vector<16x160xf32>, vector<16x160xf32> -> vector<16x160xf32>
    %143 = arith.addf %139, %142 : vector<16x160xf32>
    %144 = vector.extract_strided_slice %6 {offsets = [14, 0], sizes = [1, 160], strides = [1, 1]} : vector<17x320xf32> to vector<1x160xf32>
    %145 = vector.broadcast %144 : vector<1x160xf32> to vector<16x160xf32>
    %146 = arith.addf %143, %145 : vector<16x160xf32>
    %cst_69 = arith.constant 0.000000e+00 : f32
    %147 = vector.broadcast %cst_69 : f32 to vector<16x160xf32>
    %148 = arith.maximumf %146, %147 : vector<16x160xf32>
    %c64 = arith.constant 64 : index
    %c0_70 = arith.constant 0 : index
    %149 = vector.load %arg4[%c64, %c0_70] : memref<240x160xf32, #tpu.memory_space<vmem>>, vector<160x16xf32>
    %cst_71 = arith.constant dense<0.000000e+00> : vector<16x16xf32>
    %150 = tpu.matmul %148, %149, %cst_71 {dimension_numbers = #tpu.dot_dimension_numbers<[1], [0], [0], [1], [0, 0, 1, 1], [], []>} : vector<16x160xf32>, vector<160x16xf32>, vector<16x16xf32> -> vector<16x16xf32>
    %151 = vector.extract_strided_slice %6 {offsets = [15, 0], sizes = [1, 16], strides = [1, 1]} : vector<17x320xf32> to vector<1x16xf32>
    %152 = vector.broadcast %151 : vector<1x16xf32> to vector<16x16xf32>
    %153 = arith.addf %150, %152 : vector<16x16xf32>
    %cst_72 = arith.constant 0.000000e+00 : f32
    %154 = vector.broadcast %cst_72 : f32 to vector<16x16xf32>
    %155 = arith.maximumf %153, %154 : vector<16x16xf32>
    %c224 = arith.constant 224 : index
    %c0_73 = arith.constant 0 : index
    %156 = vector.load %arg4[%c224, %c0_73] : memref<240x160xf32, #tpu.memory_space<vmem>>, vector<16x1xf32>
    %cst_74 = arith.constant dense<0.000000e+00> : vector<16x1xf32>
    %157 = tpu.matmul %155, %156, %cst_74 {dimension_numbers = #tpu.dot_dimension_numbers<[1], [0], [0], [1], [0, 0, 1, 1], [], []>} : vector<16x16xf32>, vector<16x1xf32>, vector<16x1xf32> -> vector<16x1xf32>
    %158 = vector.extract_strided_slice %6 {offsets = [16, 0], sizes = [1, 1], strides = [1, 1]} : vector<17x320xf32> to vector<1x1xf32>
    %159 = vector.broadcast %158 : vector<1x1xf32> to vector<16x1xf32>
    %160 = arith.addf %157, %159 : vector<16x1xf32>
    %c0_75 = arith.constant 0 : index
    %c0_76 = arith.constant 0 : index
    %161 = vector.load %arg6[%c0_75, %c0_76] : memref<16x1xf32, #tpu.memory_space<vmem>>, vector<16x1xf32>
    tpu.vector_store %arg6[%c0_75, %c0_76], %160 {strides = array<i32>} : memref<16x1xf32, #tpu.memory_space<vmem>>, vector<16x1xf32>,
    return
  }
}

</mosaic_0001>

<bundles_post_ra>
// kernel: outer_simplicial_2finder_forward.1
= control target key start
LH: loop header
LB: loop body
LE: loop exit
PB: predicated region body
PF: predicated region fallthrough
CT: control target
= control target key end

     0   :  { %v2374_v0 = vmov 0   ;;  %v2375_v5 = vmov 1   ;;  %v43_v10 = vlaneseq  ;;  %vm105_vm0 = vcmask 130048   ;;  %s2377_s16 = smov 112   ;;  %s3507_s0 = inlined_call_operand.vmem [shape: s32[96,2], index: 0, kind: input, shape index: {}]   ;;  %s3508_s1 = inlined_call_operand.vmem [shape: f32[16,32], index: 1, kind: input, shape index: {}]   ;;  %s3509_s2 = inlined_call_operand.vmem [shape: f32[800,320], index: 2, kind: input, shape index: {}]   ;;  %s3510_s5 = inlined_call_operand.vmem [shape: f32[17,320], index: 5, kind: input, shape index: {}]   ;;  %s3511_s3 = inlined_call_operand.vmem [shape: f32[384,160], index: 3, kind: input, shape index: {}]   ;;  %s3512_s4 = inlined_call_operand.vmem [shape: f32[240,160], index: 4, kind: input, shape index: {}]   ;;  %s3513_s6 = inlined_call_operand.vmem [shape: f32[16,1], index: 6, kind: output, shape index: {}]  }
   0x1   :  { %2327 = vset.pattern.permute.xlu0 %v2374_v0  ;;  %v23_v1 = vld [vmem:[%s3507_s0] sm:$0xff]  ;;  %2329 = vset.pattern.permute.xlu1 %v2374_v0  ;;  %v24_v2 = vld [vmem:[%s3507_s0 + $0x8] sm:$0xff]  ;;  %v25_v3 = vld [vmem:[%s3507_s0 + $0x10] sm:$0xff]  ;;  %v2376_v14 = vmov 0.0   ;;  %vm295_vm14 = vcmask 261120  }
   0x2   :  { %46 = vperm.xlu0 %2327, %v23_v1   ;;  %49 = vperm.xlu1 %2329, %v24_v2   ;;  %v36_v4 = vld [vmem:[%s3508_s1 + $0x8] sm:$0xff]  ;;  %v26_v6 = vld [vmem:[%s3507_s0 + $0x18] sm:$0xff]  ;;  %v27_v7 = vld [vmem:[%s3507_s0 + $0x20] sm:$0xff]  ;;  %v2443_v11 = vand.u32 127, %v43_v10 }
   0x3   :  { %2331 = vset.pattern.permute.xlu2 %v2374_v0  ;;  %138 = vmatpush.msra.mxu0 %v36_v4  ;;  %v28_v8 = vld [vmem:[%s3507_s0 + $0x28] sm:$0xff]  ;;  %v35_v9 = vld [vmem:[%s3508_s1] sm:$0xff]  ;;  %v219_v37 = vld [vmem:[%s3509_s2 + $0x18] sm:$0xff] }
   0x4   :  { %52 = vperm.xlu2 %2331, %v25_v3   ;;  %191 = vmatpush.msra.mxu1 %v36_v4  ;;  %v218_v38 = vld [vmem:[%s3509_s2] sm:$0xff]  ;;  %v29_v54 = vld [vmem:[%s3507_s0 + $0x30] sm:$0xff]  ;;  %v2539_v57 = vld [vmem:[%s3507_s0 + $0x38] sm:$0xff] }
   0x5   :  { %139 = vmatpush.msra.mxu0 %v35_v9  ;;  %253 = vmatpush.msra.mxu2 %v219_v37  ;;  %v2547_v59 = vld [vmem:[%s3507_s0 + $0x48] sm:$0xff]  ;;  %v31_v60 = vld [vmem:[%s3507_s0 + $0x40] sm:$0xff]  ;;  %v2556_v61 = vld [vmem:[%s3507_s0 + $0x50] sm:$0xff] }
   0x6   :  { %192 = vmatpush.msra.mxu1 %v35_v9  ;;  %2319 = vmatpush.msra.mxu3 %v219_v37  ;;  %v290_v62 = vld [vmem:[%s3509_s2 + $0x80] sm:$0xff]  ;;  %v291_v63 = vld [vmem:[%s3509_s2 + $0x88] sm:$0xff]  ;;  %v281_v9 = vld [vmem:[%s3509_s2 + $0x38] sm:$0xff] }
   0x7   :  { %254 = vmatpush.msra.mxu2 %v218_v38  ;;  %361 = vmatpush.msrb.mxu0 %v290_v62  ;;  %v286_v4 = vld [vmem:[%s3509_s2 + $0x60] sm:$0xff]  ;;  %v468_v37 = vld [vmem:[%s3509_s2 + $0x378] sm:$0xff]  ;;  %v446_v62 = vld [vmem:[%s3509_s2 + $0x168] sm:$0xff] }
   0x8   :  { %2320 = vmatpush.msra.mxu3 %v218_v38  ;;  %396 = vmatpush.msrb.mxu1 %v291_v63  ;;  %v282_v10 = vld [vmem:[%s3509_s2 + $0x40] sm:$0xff]  ;;  %v472_v63 = vld [vmem:[%s3509_s2 + $0x3d8] sm:$0xff] }
   0xa   :  { %2328 = vset.pattern.permute.xlu0 %v2375_v5  ;;  %2330 = vset.pattern.permute.xlu1 %v2375_v5 }
   0xb   :  { %76 = vperm.xlu0 %2328, %v23_v1   ;;  %79 = vperm.xlu1 %2330, %v24_v2   ;;  %v287_v1 = vld [vmem:[%s3509_s2 + $0x68] sm:$0xff]  ;;  %v289_v2 = vld [vmem:[%s3509_s2 + $0x78] sm:$0xff] }
   0xc   :  { %2332 = vset.pattern.permute.xlu2 %v2375_v5  ;;  %362 = vmatpush.msrb.mxu0 %v287_v1 }
   0xd   :  { %82 = vperm.xlu2 %2332, %v25_v3   ;;  %v288_v3 = vld [vmem:[%s3509_s2 + $0x70] sm:$0xff]  ;;  %326 = vmatpush.msrb.mxu3 %v289_v2  ;;  %v462_v2 = vld [vmem:[%s3509_s2 + $0x2e8] sm:$0xff] }
   0xe   :  { %397 = vmatpush.msrb.mxu1 %v288_v3 }
   0xf   :  { %327 = vmatpush.msrb.mxu3 %v286_v4  ;;  %v445_v4 = vld [vmem:[%s3509_s2 + $0x150] sm:$0xff] }
  0x13   :  { %2333 = vset.pattern.permute.xlu1 %v2374_v0  ;;  %2334 = vset.pattern.permute.xlu0 %v2374_v0 }
  0x14   :  { %55 = vperm.xlu1 %2333, %v26_v6   ;;  %58 = vperm.xlu0 %2334, %v27_v7  }
  0x15   :  { %85 = vperm.xlu2 %2332, %v26_v6   ;;  %v284_v6 = vld [vmem:[%s3509_s2 + $0x50] sm:$0xff] }
  0x16   :  { %363 = vmatpush.msrb.mxu0 %v284_v6 }
  0x18   :  { %364 = vmatpush.msrb.mxu0 %v281_v9 }
  0x1c   :  { %2335 = vset.pattern.permute.xlu1 %v2375_v5  ;;  %2338 = vset.pattern.permute.xlu0 %v2375_v5 }
  0x1d   :  { %88 = vperm.xlu1 %2335, %v27_v7   ;;  %2336 = vset.pattern.permute.xlu2 %v2374_v0  ;;  %v285_v7 = vld [vmem:[%s3509_s2 + $0x58] sm:$0xff] }
  0x1e   :  { %61 = vperm.xlu2 %2336, %v28_v8   ;;  %398 = vmatpush.msrb.mxu1 %v285_v7 }
  0x20   :  { %399 = vmatpush.msrb.mxu1 %v282_v10  ;;  %v460_v10 = vld [vmem:[%s3509_s2 + $0x2b8] sm:$0xff] }
  0x25   :  { %91 = vperm.xlu1 %2335, %v28_v8   ;;  %v280_v8 = vld [vmem:[%s3509_s2 + $0x30] sm:$0xff] }
  0x26   :  { %2337 = vset.pattern.permute.xlu2 %v2375_v5  ;;  %v283_v5 = vld [vmem:[%s3509_s2 + $0x48] sm:$0xff] }
  0x27   :  { %328 = vmatpush.msrb.mxu3 %v283_v5 }
  0x29   :  { %329 = vmatpush.msrb.mxu3 %v280_v8  ;;  %v461_v8 = vld [vmem:[%s3509_s2 + $0x2d0] sm:$0xff] }
  0x5e   :  { %v53_v16 = vpop.permute.xlu2 %52 }
  0x5f   :  { %vm65_vm4 = vcmp.eq.s32.totalorder %v2443_v11, %v53_v16 }
  0x60   :  { %v2466_v21 = vsel %vm65_vm4, 1.0, %v2376_v14  ;;  %vm478_vm4 = vcmask 523264  }
  0x67   :  { %v83_v22 = vpop.permute.xlu2 %82 }
  0x68   :  { %vm95_vm7 = vcmp.eq.s32.totalorder %v2443_v11, %v83_v22 }
  0x69   :  { %v2481_v26 = vsel %vm95_vm7, 1.0, %v2376_v14 }
  0x6f   :  { %v86_v27 = vpop.permute.xlu2 %85 }
  0x70   :  { %vm96_vm9 = vcmp.eq.s32.totalorder %v2443_v11, %v86_v27 }
  0x71   :  { %v2493_v31 = vsel %vm96_vm9, 1.0, %v2376_v14 }
  0x74   :  { %v47_v12 = vpop.permute.xlu0 %46  ;;  %v50_v13 = vpop.permute.xlu1 %49 }
  0x75   :  { %vm63_vm1 = vcmp.eq.s32.totalorder %v2443_v11, %v47_v12  ;;  %vm64_vm2 = vcmp.eq.s32.totalorder %v2443_v11, %v50_v13 }
  0x76   :  { %v2447_v15 = vsel %vm63_vm1, 1.0, %v2376_v14  ;;  %v2453_v17 = vsel %vm64_vm2, 1.0, %v2376_v14 }
  0x77   :  { %2175 = vmatmul.msk.f32.vlgmr.msra.gmra.mxu0 %vm105_vm0, %v2447_v15 }
  0x78   :  { %v62_v30 = vpop.permute.xlu2 %61 }
  0x79   :  { %vm68_vm10 = vcmp.eq.s32.totalorder %v2443_v11, %v62_v30 }
  0x7a   :  { %v2502_v33 = vsel %vm68_vm10, 1.0, %v2376_v14 }
  0x7d   :  { %v77_v18 = vpop.permute.xlu0 %76  ;;  %v80_v19 = vpop.permute.xlu1 %79 }
  0x7e   :  { %vm93_vm3 = vcmp.eq.s32.totalorder %v2443_v11, %v77_v18  ;;  %vm94_vm5 = vcmp.eq.s32.totalorder %v2443_v11, %v80_v19  ;;  %v2610_v18 = vld [vmem:[%s3510_s5] sm:$0xff] }
  0x7f   :  { %v2457_v20 = vsel %vm93_vm3, 1.0, %v2376_v14  ;;  %2176 = vmatmul.msk.f32.gmra.mxu0 %vm105_vm0, %v2453_v17  ;;  %v2469_v23 = vsel %vm94_vm5, 1.0, %v2376_v14 }
  0x80   :  { %2181 = vmatmul.msk.f32.vlgmr.msra.gmra.mxu1 %vm105_vm0, %v2457_v20 }
  0x86   :  { %v56_v24 = vpop.permute.xlu1 %55  ;;  %v59_v28 = vpop.permute.xlu0 %58 }
  0x87   :  { %2177 = vmatmul.msk.f32.gmra.mxu0 %vm105_vm0, %v2466_v21  ;;  %vm66_vm6 = vcmp.eq.s32.totalorder %v2443_v11, %v56_v24  ;;  %vm67_vm8 = vcmp.eq.s32.totalorder %v2443_v11, %v59_v28 }
  0x88   :  { %2182 = vmatmul.msk.f32.gmra.mxu1 %vm105_vm0, %v2469_v23  ;;  %v2478_v25 = vsel %vm66_vm6, 1.0, %v2376_v14  ;;  %v2490_v29 = vsel %vm67_vm8, 1.0, %v2376_v14  ;;  %vm1210_vm6 = vcmask 785408  }
  0x8f   :  { %2178 = vmatmul.msk.f32.gmra.mxu0 %vm105_vm0, %v2478_v25  ;;  %v89_v32 = vpop.permute.xlu1 %88 }
  0x90   :  { %2183 = vmatmul.msk.f32.gmra.mxu1 %vm105_vm0, %v2481_v26  ;;  %vm97_vm11 = vcmp.eq.s32.totalorder %v2443_v11, %v89_v32 }
  0x91   :  { %v2505_v34 = vsel %vm97_vm11, 1.0, %v2376_v14 }
  0x97   :  { %2179 = vmatmul.msk.f32.gmra.mxu0 %vm105_vm0, %v2490_v29  ;;  %v92_v35 = vpop.permute.xlu1 %91 }
  0x98   :  { %2184 = vmatmul.msk.f32.gmra.mxu1 %vm105_vm0, %v2493_v31  ;;  %vm98_vm12 = vcmp.eq.s32.totalorder %v2443_v11, %v92_v35 }
  0x99   :  { %v2513_v36 = vsel %vm98_vm12, 1.0, %v2376_v14 }
  0x9f   :  { %2180 = vmatmul.msk.f32.gmra.mxu0 %vm105_vm0, %v2502_v33 }
  0xa0   :  { %2185 = vmatmul.msk.f32.gmra.mxu1 %vm105_vm0, %v2505_v34 }
  0xa8   :  { %2186 = vmatmul.msk.f32.gmra.mxu1 %vm105_vm0, %v2513_v36 }
  0xf4   :  { %v141_v39 = vpop.f32.mrf.mxu0 }
  0xfc   :  { %v144_v40 = vpop.f32.mrf.mxu0 }
  0xfd   :  { %v194_v41 = vpop.f32.mrf.mxu1 }
  0xfe   :  { %v212_v42 = vmul.f32 %v194_v41, %v141_v39  ;;  %v451_v39 = vld [vmem:[%s3509_s2 + $0x1e0] sm:$0xff]  ;;  %v450_v41 = vld [vmem:[%s3509_s2 + $0x1c8] sm:$0xff] }
 0x100   :  { %669 = vrot.lane.b32.xlu2 %v212_v42, %s2377_s16  ;;  %2187 = vmatmul.msk.f32.vlgmr.msra.gmra.mxu2 %vm105_vm0, %v212_v42  ;;  %v466_v42 = vld [vmem:[%s3509_s2 + $0x348] sm:$0xff] }
 0x104   :  { %v147_v45 = vpop.f32.mrf.mxu0 }
 0x105   :  { %v197_v43 = vpop.f32.mrf.mxu1 }
 0x106   :  { %v213_v44 = vmul.f32 %v197_v43, %v144_v40  ;;  %v467_v40 = vld [vmem:[%s3509_s2 + $0x360] sm:$0xff]  ;;  %v476_v43 = vld [vmem:[%s3509_s2 + $0x438] sm:$0xff] }
 0x107   :  { %575 = vmatpush.msra.mxu0 %v476_v43  ;;  %v440_v43 = vld [vmem:[%s3509_s2 + $0xd8] sm:$0xff] }
 0x108   :  { %671 = vrot.lane.b32.xlu0 %v213_v44, %s2377_s16  ;;  %2188 = vmatmul.msk.f32.gmra.mxu2 %vm105_vm0, %v213_v44 }
 0x10c   :  { %v150_v48 = vpop.f32.mrf.mxu0 }
 0x10d   :  { %v200_v46 = vpop.f32.mrf.mxu1 }
 0x10e   :  { %v214_v47 = vmul.f32 %v200_v46, %v147_v45  ;;  %v449_v46 = vld [vmem:[%s3509_s2 + $0x1b0] sm:$0xff] }
 0x110   :  { %673 = vrot.lane.b32.xlu1 %v214_v47, %s2377_s16  ;;  %2189 = vmatmul.msk.f32.gmra.mxu2 %vm105_vm0, %v214_v47 }
 0x114   :  { %v153_v51 = vpop.f32.mrf.mxu0 }
 0x115   :  { %v203_v49 = vpop.f32.mrf.mxu1 }
 0x116   :  { %v215_v50 = vmul.f32 %v203_v49, %v150_v48  ;;  %v465_v48 = vld [vmem:[%s3509_s2 + $0x330] sm:$0xff]  ;;  %v475_v49 = vld [vmem:[%s3509_s2 + $0x420] sm:$0xff] }
 0x117   :  { %576 = vmatpush.msra.mxu0 %v475_v49  ;;  %v437_v49 = vld [vmem:[%s3509_s2 + $0x90] sm:$0xff] }
 0x118   :  { %675 = vrot.lane.b32.xlu2 %v215_v50, %s2377_s16  ;;  %2190 = vmatmul.msk.f32.gmra.mxu2 %vm105_vm0, %v215_v50 }
 0x11c   :  { %v156_v55 = vpop.f32.mrf.mxu0 }
 0x11d   :  { %v206_v52 = vpop.f32.mrf.mxu1 }
 0x11e   :  { %v216_v53 = vmul.f32 %v206_v52, %v153_v51  ;;  %v448_v52 = vld [vmem:[%s3509_s2 + $0x198] sm:$0xff] }
 0x120   :  { %677 = vrot.lane.b32.xlu0 %v216_v53, %s2377_s16  ;;  %2191 = vmatmul.msk.f32.gmra.mxu2 %vm105_vm0, %v216_v53  ;;  %v474_v53 = vld [vmem:[%s3509_s2 + $0x408] sm:$0xff] }
 0x121   :  { %1119 = vperm.xlu2 %2337, %v29_v54   ;;  %577 = vmatpush.msra.mxu0 %v474_v53 }
 0x125   :  { %v209_v56 = vpop.f32.mrf.mxu1 }
 0x126   :  { %v217_v58 = vmul.f32 %v209_v56, %v156_v55  ;;  %v464_v55 = vld [vmem:[%s3509_s2 + $0x318] sm:$0xff]  ;;  %v447_v56 = vld [vmem:[%s3509_s2 + $0x180] sm:$0xff] }
 0x128   :  { %1122 = vperm.xlu0 %2338, %v2539_v57   ;;  %679 = vrot.lane.b32.xlu1 %v217_v58, %s2377_s16 }
 0x129   :  { %2192 = vmatmul.msk.f32.vlgmr.msra.gmra.mxu3 %vm105_vm0, %v217_v58  ;;  %1128 = vperm.xlu2 %2337, %v2547_v59   ;;  %v473_v58 = vld [vmem:[%s3509_s2 + $0x3f0] sm:$0xff] }
 0x12a   :  { %532 = vmatpush.msra.mxu3 %v468_v37  ;;  %578 = vmatpush.msra.mxu0 %v473_v58 }
 0x12c   :  { %533 = vmatpush.msra.mxu3 %v467_v40  ;;  %579 = vmatpush.msra.mxu0 %v472_v63  ;;  %v471_v40 = vld [vmem:[%s3509_s2 + $0x3c0] sm:$0xff]  ;;  %v2798_v63 = vperm.slane %v2610_v18, 1 }
 0x12e   :  { %534 = vmatpush.msra.mxu3 %v466_v42  ;;  %580 = vmatpush.msra.mxu0 %v471_v40  ;;  %v470_v42 = vld [vmem:[%s3509_s2 + $0x3a8] sm:$0xff] }
 0x130   :  { %1125 = vperm.xlu1 %2335, %v31_v60   ;;  %535 = vmatpush.msra.mxu3 %v465_v48  ;;  %v438_v48 = vld [vmem:[%s3509_s2 + $0xa8] sm:$0xff] }
 0x131   :  { %581 = vmatpush.msra.mxu0 %v470_v42 }
 0x132   :  { %536 = vmatpush.msra.mxu3 %v464_v55 }
 0x138   :  { %1131 = vperm.xlu1 %2335, %v2556_v61  }
 0x140   :  { %2339 = vset.pattern.permute.xlu1 %v2374_v0 }
 0x141   :  { %1149 = vperm.xlu1 %2339, %v29_v54  }
 0x149   :  { %1155 = vperm.xlu1 %2339, %v31_v60   ;;  %v463_v60 = vld [vmem:[%s3509_s2 + $0x300] sm:$0xff] }
 0x14a   :  { %1178 = vxpose.xlu0.b32.start [1/12] (short) (narrow) %v2457_v20, 32  ;;  %v2614_v20 = vperm.slane %v2610_v18, 0  ;;  %537 = vmatpush.msra.mxu3 %v463_v60 }
 0x14c   :  { %538 = vmatpush.msra.mxu3 %v462_v2  ;;  %v666_v2 = vld [vmem:[%s3509_s2 + $0x4b0] sm:$0xff] }
 0x14e   :  { %539 = vmatpush.msra.mxu3 %v461_v8 }
 0x150   :  { %540 = vmatpush.msra.mxu3 %v460_v10 }
 0x152   :  { %1179 = vxpose.xlu0.b32.cont [2/12] (short) (narrow) %v2469_v23, 32 }
 0x15a   :  { %1180 = vxpose.xlu0.b32.cont [3/12] (short) (narrow) %v2481_v26, 32  ;;  %v2601_v12 = vpop.permute.xlu2 %669 }
 0x162   :  { %1181 = vxpose.xlu0.b32.cont [4/12] (short) (narrow) %v2493_v31, 32 }
 0x16a   :  { %1182 = vxpose.xlu0.b32.cont [5/12] (short) (narrow) %v2505_v34, 32 }
 0x172   :  { %1183 = vxpose.xlu0.b32.cont [6/12] (short) (narrow) %v2513_v36, 32  ;;  %v2604_v13 = vpop.permute.xlu2 %675  ;;  %v452_v36 = vld [vmem:[%s3509_s2 + $0x1f8] sm:$0xff] }
 0x173   :  { %497 = vmatpush.msrb.mxu2 %v452_v36 }
 0x175   :  { %498 = vmatpush.msrb.mxu2 %v451_v39  ;;  %v455_v39 = vld [vmem:[%s3509_s2 + $0x240] sm:$0xff] }
 0x177   :  { %499 = vmatpush.msrb.mxu2 %v450_v41  ;;  %v454_v41 = vld [vmem:[%s3509_s2 + $0x228] sm:$0xff] }
 0x179   :  { %500 = vmatpush.msrb.mxu2 %v449_v46  ;;  %v453_v46 = vld [vmem:[%s3509_s2 + $0x210] sm:$0xff] }
 0x17a   :  { %v2620_v26 = vpop.permute.xlu0 %671 }
 0x17b   :  { %v1120_v16 = vpop.permute.xlu2 %1119  ;;  %501 = vmatpush.msrb.mxu2 %v448_v52  ;;  %v2787_v52 = vld [vmem:[%s3510_s5 + $0x10] sm:$0xff] }
 0x17c   :  { %vm1136_vm13 = vcmp.eq.s32.totalorder %v2443_v11, %v1120_v16  ;;  %v444_v16 = vld [vmem:[%s3509_s2 + $0x138] sm:$0xff] }
 0x17d   :  { %v1142_v19 = vsel %vm1136_vm13, 1.0, %v2376_v14  ;;  %502 = vmatpush.msrb.mxu2 %v447_v56  ;;  %vm2168_vm13 = vcmask 7168  }
 0x17e   :  { %1184 = vxpose.xlu0.b32.cont [7/12] (short) (narrow) %v1142_v19, 32  ;;  %v459_v19 = vld [vmem:[%s3509_s2 + $0x2a0] sm:$0xff] }
 0x17f   :  { %503 = vmatpush.msrb.mxu2 %v446_v62  ;;  %541 = vmatpush.msra.mxu3 %v459_v19 }
 0x181   :  { %504 = vmatpush.msrb.mxu2 %v445_v4 }
 0x182   :  { %v2626_v31 = vpop.permute.xlu1 %673 }
 0x183   :  { %v256_v22 = vpop.f32.mrf.mxu2  ;;  %v1129_v7 = vpop.permute.xlu2 %1128  ;;  %505 = vmatpush.msrb.mxu2 %v444_v16 }
 0x184   :  { %v257_v23 = vadd.f32 %v256_v22, %v2614_v20  ;;  %vm1139_vm2 = vcmp.eq.s32.totalorder %v2443_v11, %v1129_v7  ;;  %v443_v22 = vld [vmem:[%s3509_s2 + $0x120] sm:$0xff] }
 0x185   :  { %506 = vmatpush.msrb.mxu2 %v443_v22 }
 0x186   :  { %v274_v24 = vmax.f32 %v257_v23, 0.0  ;;  %v1145_v23 = vsel %vm1139_vm2, 1.0, %v2376_v14 }
 0x188   :  { %2193 = vmatmul.msk.f32.vlgmr.msrb.gmra.mxu3 %vm295_vm14, %v274_v24  ;;  %2199 = vmatmul.msk.f32.vlgmr.msrb.gmra.mxu0 %vm295_vm14, %v274_v24 }
 0x189   :  { %2205 = vmatmul.msk.f32.vlgmr.msrb.gmra.mxu1 %vm295_vm14, %v274_v24  ;;  %v458_v24 = vld [vmem:[%s3509_s2 + $0x288] sm:$0xff] }
 0x18a   :  { %542 = vmatpush.msra.mxu3 %v458_v24 }
 0x18b   :  { %v259_v27 = vpop.f32.mrf.mxu2 }
 0x18c   :  { %v260_v28 = vadd.f32 %v259_v27, %v2614_v20  ;;  %v442_v27 = vld [vmem:[%s3509_s2 + $0x108] sm:$0xff] }
 0x18d   :  { %507 = vmatpush.msrb.mxu2 %v442_v27 }
 0x18e   :  { %v275_v30 = vmax.f32 %v260_v28, 0.0 }
 0x190   :  { %2194 = vmatmul.msk.f32.gmra.mxu3 %vm295_vm14, %v275_v30  ;;  %2200 = vmatmul.msk.f32.gmra.mxu0 %vm295_vm14, %v275_v30 }
 0x191   :  { %2206 = vmatmul.msk.f32.gmra.mxu1 %vm295_vm14, %v275_v30  ;;  %v457_v30 = vld [vmem:[%s3509_s2 + $0x270] sm:$0xff] }
 0x192   :  { %v2628_v32 = vpop.permute.xlu0 %677  ;;  %543 = vmatpush.msra.mxu3 %v457_v30 }
 0x193   :  { %v262_v34 = vpop.f32.mrf.mxu2 }
 0x194   :  { %v263_v35 = vadd.f32 %v262_v34, %v2614_v20 }
 0x196   :  { %v276_v38 = vmax.f32 %v263_v35, 0.0  ;;  %v441_v35 = vld [vmem:[%s3509_s2 + $0xf0] sm:$0xff] }
 0x197   :  { %508 = vmatpush.msrb.mxu2 %v441_v35 }
 0x198   :  { %2195 = vmatmul.msk.f32.gmra.mxu3 %vm295_vm14, %v276_v38  ;;  %2201 = vmatmul.msk.f32.gmra.mxu0 %vm295_vm14, %v276_v38 }
 0x199   :  { %2207 = vmatmul.msk.f32.gmra.mxu1 %vm295_vm14, %v276_v38  ;;  %v456_v38 = vld [vmem:[%s3509_s2 + $0x258] sm:$0xff]  ;;  %509 = vmatpush.msrb.mxu2 %v440_v43 }
 0x19a   :  { %v2655_v44 = vpop.permute.xlu1 %679  ;;  %v1123_v45 = vpop.permute.xlu0 %1122  ;;  %544 = vmatpush.msra.mxu3 %v456_v38 }
 0x19b   :  { %vm1137_vm15 = vcmp.eq.s32.totalorder %v2443_v11, %v1123_v45  ;;  %v265_v47 = vpop.f32.mrf.mxu2  ;;  %v439_v45 = vld [vmem:[%s3509_s2 + $0xc0] sm:$0xff] }
 0x19c   :  { %v1143_v50 = vsel %vm1137_vm15, 1.0, %v2376_v14  ;;  %v266_v51 = vadd.f32 %v265_v47, %v2614_v20  ;;  %545 = vmatpush.msra.mxu3 %v455_v39  ;;  %v469_v47 = vld [vmem:[%s3509_s2 + $0x390] sm:$0xff]  ;;  %510 = vmatpush.msrb.mxu2 %v439_v45 }
 0x19d   :  { %1185 = vxpose.xlu0.b32.cont [8/12] (short) (narrow) %v1143_v50, 32  ;;  %582 = vmatpush.msra.mxu0 %v469_v47  ;;  %v667_v50 = vld [vmem:[%s3509_s2 + $0x4c8] sm:$0xff] }
 0x19e   :  { %v277_v54 = vmax.f32 %v266_v51, 0.0  ;;  %546 = vmatpush.msra.mxu3 %v454_v41  ;;  %511 = vmatpush.msrb.mxu2 %v438_v48  ;;  %v2782_v51 = vld [vmem:[%s3510_s5 + $0x8] sm:$0xff] }
 0x19f   :  { %v2790_v53 = vperm.slane %v2782_v51, 1 }
 0x1a0   :  { %2196 = vmatmul.msk.f32.gmra.mxu3 %vm295_vm14, %v277_v54  ;;  %2202 = vmatmul.msk.f32.gmra.mxu0 %vm295_vm14, %v277_v54 }
 0x1a1   :  { %2208 = vmatmul.msk.f32.gmra.mxu1 %vm295_vm14, %v277_v54  ;;  %547 = vmatpush.msra.mxu3 %v453_v46  ;;  %v2793_v54 = vperm.slane %v2787_v52, 1 }
 0x1a2   :  { %v1126_v1 = vpop.permute.xlu1 %1125  ;;  %512 = vmatpush.msrb.mxu2 %v437_v49 }
 0x1a3   :  { %vm1138_vm1 = vcmp.eq.s32.totalorder %v2443_v11, %v1126_v1  ;;  %v268_v3 = vpop.f32.mrf.mxu2 }
 0x1a4   :  { %v1144_v5 = vsel %vm1138_vm1, 1.0, %v2376_v14  ;;  %v269_v6 = vadd.f32 %v268_v3, %v2614_v20  ;;  %707 = vmatpush.msra.mxu2 %v667_v50 }
 0x1a5   :  { %1186 = vxpose.xlu0.b32.cont [9/12] (short) (narrow) %v1144_v5, 32 }
 0x1a6   :  { %v278_v9 = vmax.f32 %v269_v6, 0.0  ;;  %708 = vmatpush.msra.mxu2 %v666_v2 }
 0x1a8   :  { %2197 = vmatmul.msk.f32.gmra.mxu3 %vm295_vm14, %v278_v9  ;;  %2203 = vmatmul.msk.f32.gmra.mxu0 %vm295_vm14, %v278_v9 }
 0x1a9   :  { %2209 = vmatmul.msk.f32.gmra.mxu1 %vm295_vm14, %v278_v9 }
 0x1aa   :  { %v1132_v36 = vpop.permute.xlu1 %1131 }
 0x1ab   :  { %vm1140_vm3 = vcmp.eq.s32.totalorder %v2443_v11, %v1132_v36 }
 0x1ac   :  { %v271_v28 = vpop.f32.mrf.mxu3 }
 0x1ad   :  { %v272_v34 = vadd.f32 %v271_v28, %v2614_v20  ;;  %1187 = vxpose.xlu0.b32.cont [10/12] (short) (narrow) %v1145_v23, 32  ;;  %v1146_v20 = vsel %vm1140_vm3, 1.0, %v2376_v14 }
 0x1af   :  { %v279_v37 = vmax.f32 %v272_v34, 0.0 }
 0x1b1   :  { %2198 = vmatmul.msk.f32.gmra.mxu3 %vm295_vm14, %v279_v37  ;;  %2204 = vmatmul.msk.f32.gmra.mxu0 %vm295_vm14, %v279_v37 }
 0x1b2   :  { %2210 = vmatmul.msk.f32.gmra.mxu1 %vm295_vm14, %v279_v37 }
 0x1b5   :  { %1188 = vxpose.xlu0.b32.cont [11/12] (short) (narrow) %v1146_v20, 32 }
 0x205   :  { %v366_v55 = vpop.f32.mrf.mxu0 }
 0x206   :  { %v367_v56 = vadd.f32 %v366_v55, %v2790_v53  ;;  %v401_v58 = vpop.f32.mrf.mxu1 }
 0x207   :  { %v402_v60 = vadd.f32 %v401_v58, %v2793_v54 }
 0x208   :  { %v420_v62 = vmax.f32 %v367_v56, 0.0 }
 0x209   :  { %v421_v1 = vmax.f32 %v402_v60, 0.0 }
 0x20a   :  { %548 = vmatmul.f32.vlgmr.msra.gmra.mxu3 %v420_v62 }
 0x20b   :  { %2211 = vmatmul.msk.f32.vlgmr.msra.gmra.mxu0 %vm478_vm4, %v421_v1  ;;  %v331_v3 = vpop.f32.mrf.mxu3 }
 0x20c   :  { %v332_v4 = vadd.f32 %v331_v3, %v2798_v63 }
 0x20d   :  { %v369_v5 = vpop.f32.mrf.mxu0 }
 0x20e   :  { %v419_v6 = vmax.f32 %v332_v4, 0.0  ;;  %v370_v7 = vadd.f32 %v369_v5, %v2790_v53  ;;  %v404_v8 = vpop.f32.mrf.mxu1 }
 0x20f   :  { %v405_v9 = vadd.f32 %v404_v8, %v2793_v54 }
 0x210   :  { %513 = vmatmul.f32.vlgmr.msrb.gmra.mxu2 %v419_v6  ;;  %v423_v10 = vmax.f32 %v370_v7, 0.0 }
 0x211   :  { %v424_v16 = vmax.f32 %v405_v9, 0.0 }
 0x212   :  { %551 = vmatmul.f32.gmra.mxu3 %v423_v10 }
 0x213   :  { %2212 = vmatmul.msk.f32.gmra.mxu0 %vm478_vm4, %v424_v16  ;;  %v334_v19 = vpop.f32.mrf.mxu3 }
 0x214   :  { %v335_v22 = vadd.f32 %v334_v19, %v2798_v63  ;;  %v741_v19 = vld [vmem:[%s3509_s2 + $0x518] sm:$0xff] }
 0x215   :  { %v372_v23 = vpop.f32.mrf.mxu0 }
 0x216   :  { %v373_v24 = vadd.f32 %v372_v23, %v2790_v53  ;;  %v407_v27 = vpop.f32.mrf.mxu1  ;;  %v422_v28 = vmax.f32 %v335_v22, 0.0  ;;  %v477_v22 = vperm.slane %v2610_v18, 2  ;;  %v737_v23 = vld [vmem:[%s3509_s2 + $0x4f8] sm:$0xff] }
 0x217   :  { %v408_v30 = vadd.f32 %v407_v27, %v2793_v54 }
 0x218   :  { %516 = vmatmul.f32.gmra.mxu2 %v422_v28  ;;  %v426_v34 = vmax.f32 %v373_v24, 0.0 }
 0x219   :  { %v427_v35 = vmax.f32 %v408_v30, 0.0 }
 0x21a   :  { %554 = vmatmul.f32.gmra.mxu3 %v426_v34  ;;  %v742_v34 = vld [vmem:[%s3509_s2 + $0x520] sm:$0xff] }
 0x21b   :  { %2213 = vmatmul.msk.f32.gmra.mxu0 %vm478_vm4, %v427_v35  ;;  %v337_v36 = vpop.f32.mrf.mxu3  ;;  %v738_v35 = vld [vmem:[%s3509_s2 + $0x500] sm:$0xff] }
 0x21c   :  { %v338_v37 = vadd.f32 %v337_v36, %v2798_v63 }
 0x21d   :  { %v375_v38 = vpop.f32.mrf.mxu0 }
 0x21e   :  { %v376_v20 = vadd.f32 %v375_v38, %v2790_v53  ;;  %v410_v39 = vpop.f32.mrf.mxu1  ;;  %v425_v40 = vmax.f32 %v338_v37, 0.0 }
 0x21f   :  { %v411_v41 = vadd.f32 %v410_v39, %v2793_v54 }
 0x220   :  { %519 = vmatmul.f32.gmra.mxu2 %v425_v40  ;;  %v429_v42 = vmax.f32 %v376_v20, 0.0 }
 0x221   :  { %v430_v43 = vmax.f32 %v411_v41, 0.0  ;;  %v734_v41 = vld [vmem:[%s3509_s2 + $0x4e0] sm:$0xff] }
 0x222   :  { %557 = vmatmul.f32.gmra.mxu3 %v429_v42  ;;  %v739_v42 = vld [vmem:[%s3509_s2 + $0x508] sm:$0xff] }
 0x223   :  { %2214 = vmatmul.msk.f32.gmra.mxu0 %vm478_vm4, %v430_v43  ;;  %v340_v45 = vpop.f32.mrf.mxu3 }
 0x224   :  { %v341_v46 = vadd.f32 %v340_v45, %v2798_v63 }
 0x225   :  { %v378_v47 = vpop.f32.mrf.mxu0 }
 0x226   :  { %v379_v48 = vadd.f32 %v378_v47, %v2790_v53  ;;  %v413_v49 = vpop.f32.mrf.mxu1  ;;  %v428_v50 = vmax.f32 %v341_v46, 0.0 }
 0x227   :  { %v414_v55 = vadd.f32 %v413_v49, %v2793_v54 }
 0x228   :  { %522 = vmatmul.f32.gmra.mxu2 %v428_v50  ;;  %v432_v56 = vmax.f32 %v379_v48, 0.0 }
 0x229   :  { %v433_v58 = vmax.f32 %v414_v55, 0.0  ;;  %v735_v55 = vld [vmem:[%s3509_s2 + $0x4e8] sm:$0xff] }
 0x22a   :  { %560 = vmatmul.f32.gmra.mxu3 %v432_v56 }
 0x22b   :  { %2215 = vmatmul.msk.f32.gmra.mxu0 %vm478_vm4, %v433_v58  ;;  %v343_v60 = vpop.f32.mrf.mxu3 }
 0x22c   :  { %v344_v62 = vadd.f32 %v343_v60, %v2798_v63 }
 0x22e   :  { %v381_v1 = vpop.f32.mrf.mxu0  ;;  %v431_v2 = vmax.f32 %v344_v62, 0.0 }
 0x22f   :  { %v382_v3 = vadd.f32 %v381_v1, %v2790_v53  ;;  %v416_v4 = vpop.f32.mrf.mxu1  ;;  %v611_v53 = vld [vmem:[%s3509_s2 + $0x498] sm:$0xff] }
 0x230   :  { %v417_v5 = vadd.f32 %v416_v4, %v2793_v54  ;;  %525 = vmatmul.f32.gmra.mxu2 %v431_v2  ;;  %v610_v54 = vld [vmem:[%s3509_s2 + $0x480] sm:$0xff]  ;;  %643 = vmatpush.msra.mxu1 %v611_v53 }
 0x231   :  { %v435_v6 = vmax.f32 %v382_v3, 0.0  ;;  %v736_v3 = vld [vmem:[%s3509_s2 + $0x4f0] sm:$0xff] }
 0x232   :  { %v436_v7 = vmax.f32 %v417_v5, 0.0  ;;  %644 = vmatpush.msra.mxu1 %v610_v54 }
 0x233   :  { %563 = vmatmul.f32.gmra.mxu3 %v435_v6 }
 0x234   :  { %2216 = vmatmul.msk.f32.gmra.mxu0 %vm478_vm4, %v436_v7  ;;  %v346_v8 = vpop.f32.mrf.mxu3 }
 0x235   :  { %v347_v9 = vadd.f32 %v346_v8, %v2798_v63 }
 0x237   :  { %v434_v10 = vmax.f32 %v347_v9, 0.0 }
 0x239   :  { %528 = vmatmul.f32.gmra.mxu2 %v434_v10 }
 0x241   :  { %2223 = vmatmul.msk.f32.vlgmr.msra.gmra.mxu2 %vm105_vm0, %v2601_v12  ;;  %v609_v12 = vld [vmem:[%s3509_s2 + $0x468] sm:$0xff] }
 0x242   :  { %645 = vmatpush.msra.mxu1 %v609_v12 }
 0x249   :  { %2224 = vmatmul.msk.f32.gmra.mxu2 %vm105_vm0, %v2620_v26  ;;  %v743_v26 = vld [vmem:[%s3509_s2 + $0x528] sm:$0xff] }
 0x24a   :  { %779 = vmatpush.msrb.mxu3 %v743_v26 }
 0x251   :  { %2225 = vmatmul.msk.f32.gmra.mxu2 %vm105_vm0, %v2626_v31  ;;  %v744_v31 = vld [vmem:[%s3509_s2 + $0x530] sm:$0xff] }
 0x252   :  { %814 = vmatpush.msrb.mxu0 %v744_v31 }
 0x254   :  { %815 = vmatpush.msrb.mxu0 %v741_v19 }
 0x256   :  { %816 = vmatpush.msrb.mxu0 %v738_v35 }
 0x258   :  { %817 = vmatpush.msrb.mxu0 %v735_v55  ;;  %v903_v55 = vld [vmem:[%s3509_s2 + $0x678] sm:$0xff] }
 0x259   :  { %2226 = vmatmul.msk.f32.gmra.mxu2 %vm105_vm0, %v2604_v13  ;;  %v608_v13 = vld [vmem:[%s3509_s2 + $0x450] sm:$0xff] }
 0x25a   :  { %646 = vmatpush.msra.mxu1 %v608_v13 }
 0x261   :  { %2227 = vmatmul.msk.f32.gmra.mxu2 %vm105_vm0, %v2628_v32  ;;  %v740_v32 = vld [vmem:[%s3509_s2 + $0x510] sm:$0xff] }
 0x262   :  { %780 = vmatpush.msrb.mxu3 %v740_v32 }
 0x264   :  { %781 = vmatpush.msrb.mxu3 %v737_v23 }
 0x266   :  { %782 = vmatpush.msrb.mxu3 %v734_v41 }
 0x269   :  { %2228 = vmatmul.msk.f32.gmra.mxu2 %vm105_vm0, %v2655_v44  ;;  %v745_v44 = vld [vmem:[%s3509_s2 + $0x538] sm:$0xff] }
 0x26a   :  { %849 = vmatpush.msrb.mxu1 %v745_v44 }
 0x26c   :  { %850 = vmatpush.msrb.mxu1 %v742_v34 }
 0x26e   :  { %851 = vmatpush.msrb.mxu1 %v739_v42 }
 0x270   :  { %852 = vmatpush.msrb.mxu1 %v736_v3  ;;  %v928_v3 = vld [vmem:[%s3509_s2 + $0x8d0] sm:$0xff] }
 0x288   :  { %v584_v16 = vpop.f32.mrf.mxu0 }
 0x28d   :  { %v549_v63 = vpop.f32.mrf.mxu3 }
 0x290   :  { %v587_v36 = vpop.f32.mrf.mxu0 }
 0x293   :  { %v514_v24 = vpop.f32.mrf.mxu2 }
 0x294   :  { %v515_v27 = vadd.f32 %v514_v24, %v477_v22 }
 0x295   :  { %v552_v30 = vpop.f32.mrf.mxu3 }
 0x296   :  { %v550_v28 = vadd.f32 %v549_v63, %v515_v27  ;;  %v668_v63 = vperm.slane %v2610_v18, 4 }
 0x298   :  { %v585_v37 = vadd.f32 %v584_v16, %v550_v28  ;;  %v590_v46 = vpop.f32.mrf.mxu0 }
 0x29a   :  { %v602_v38 = vmax.f32 %v585_v37, 0.0 }
 0x29b   :  { %v517_v20 = vpop.f32.mrf.mxu2 }
 0x29c   :  { %v518_v39 = vadd.f32 %v517_v20, %v477_v22  ;;  %2217 = vmatmul.msk.f32.vlgmr.msra.gmra.mxu1 %vm295_vm14, %v602_v38 }
 0x29d   :  { %v555_v43 = vpop.f32.mrf.mxu3 }
 0x29e   :  { %v553_v40 = vadd.f32 %v552_v30, %v518_v39 }
 0x2a0   :  { %v588_v45 = vadd.f32 %v587_v36, %v553_v40  ;;  %v593_v1 = vpop.f32.mrf.mxu0 }
 0x2a2   :  { %v603_v47 = vmax.f32 %v588_v45, 0.0 }
 0x2a3   :  { %v520_v48 = vpop.f32.mrf.mxu2 }
 0x2a4   :  { %v521_v49 = vadd.f32 %v520_v48, %v477_v22  ;;  %2218 = vmatmul.msk.f32.gmra.mxu1 %vm295_vm14, %v603_v47  ;;  %v905_v47 = vld [vmem:[%s3509_s2 + $0x6a8] sm:$0xff] }
 0x2a5   :  { %v558_v58 = vpop.f32.mrf.mxu3  ;;  %949 = vmatpush.msrb.mxu2 %v905_v47  ;;  %v921_v48 = vld [vmem:[%s3509_s2 + $0x828] sm:$0xff]  ;;  %v3053_v47 = vperm.slane %v2782_v51, 5 }
 0x2a6   :  { %v556_v50 = vadd.f32 %v555_v43, %v521_v49  ;;  %v904_v49 = vld [vmem:[%s3509_s2 + $0x690] sm:$0xff]  ;;  %984 = vmatpush.msra.mxu3 %v921_v48 }
 0x2a7   :  { %950 = vmatpush.msrb.mxu2 %v904_v49 }
 0x2a8   :  { %v591_v56 = vadd.f32 %v590_v46, %v556_v50  ;;  %v596_v10 = vpop.f32.mrf.mxu0  ;;  %v34_v46 = vld [vmem:[%s3507_s0 + $0x58] sm:$0xff]  ;;  %v920_v50 = vld [vmem:[%s3509_s2 + $0x810] sm:$0xff] }
 0x2a9   :  { %1134 = vperm.xlu2 %2337, %v34_v46   ;;  %985 = vmatpush.msra.mxu3 %v920_v50 }
 0x2aa   :  { %v604_v60 = vmax.f32 %v591_v56, 0.0  ;;  %v919_v56 = vld [vmem:[%s3509_s2 + $0x7f8] sm:$0xff]  ;;  %951 = vmatpush.msrb.mxu2 %v903_v55  ;;  %v3060_v55 = vperm.slane %v2787_v52, 5 }
 0x2ab   :  { %v523_v62 = vpop.f32.mrf.mxu2  ;;  %986 = vmatpush.msra.mxu3 %v919_v56 }
 0x2ac   :  { %v524_v2 = vadd.f32 %v523_v62, %v477_v22  ;;  %2219 = vmatmul.msk.f32.gmra.mxu1 %vm295_vm14, %v604_v60  ;;  %v918_v60 = vld [vmem:[%s3509_s2 + $0x7e0] sm:$0xff]  ;;  %v901_v62 = vld [vmem:[%s3509_s2 + $0x648] sm:$0xff] }
 0x2ad   :  { %v561_v8 = vpop.f32.mrf.mxu3  ;;  %987 = vmatpush.msra.mxu3 %v918_v60 }
 0x2ae   :  { %v559_v4 = vadd.f32 %v558_v58, %v524_v2  ;;  %v902_v58 = vld [vmem:[%s3509_s2 + $0x660] sm:$0xff]  ;;  %v900_v2 = vld [vmem:[%s3509_s2 + $0x630] sm:$0xff] }
 0x2af   :  { %952 = vmatpush.msrb.mxu2 %v902_v58 }
 0x2b0   :  { %v594_v5 = vadd.f32 %v593_v1, %v559_v4  ;;  %v917_v1 = vld [vmem:[%s3509_s2 + $0x7c8] sm:$0xff]  ;;  %v916_v4 = vld [vmem:[%s3509_s2 + $0x7b0] sm:$0xff] }
 0x2b1   :  { %v599_v44 = vpop.f32.mrf.mxu0  ;;  %2340 = vset.pattern.permute.xlu2 %v2374_v0  ;;  %953 = vmatpush.msrb.mxu2 %v901_v62 }
 0x2b2   :  { %v605_v6 = vmax.f32 %v594_v5, 0.0  ;;  %1152 = vperm.xlu2 %2340, %v2539_v57   ;;  %v929_v57 = vld [vmem:[%s3509_s2 + $0x8e8] sm:$0xff]  ;;  %988 = vmatpush.msra.mxu3 %v917_v1  ;;  %v915_v5 = vld [vmem:[%s3509_s2 + $0x798] sm:$0xff] }
 0x2b3   :  { %v526_v7 = vpop.f32.mrf.mxu2  ;;  %1027 = vmatpush.msra.mxu0 %v929_v57  ;;  %954 = vmatpush.msrb.mxu2 %v900_v2  ;;  %v3065_v57 = vperm.slane %v2610_v18, 5 }
 0x2b4   :  { %v527_v9 = vadd.f32 %v526_v7, %v477_v22  ;;  %2220 = vmatmul.msk.f32.gmra.mxu1 %vm295_vm14, %v605_v6  ;;  %989 = vmatpush.msra.mxu3 %v916_v4  ;;  %v898_v6 = vld [vmem:[%s3509_s2 + $0x600] sm:$0xff]  ;;  %v927_v7 = vld [vmem:[%s3509_s2 + $0x8b8] sm:$0xff] }
 0x2b5   :  { %1028 = vmatpush.msra.mxu0 %v928_v3 }
 0x2b6   :  { %v562_v53 = vadd.f32 %v561_v8, %v527_v9  ;;  %v564_v31 = vpop.f32.mrf.mxu3  ;;  %v914_v8 = vld [vmem:[%s3509_s2 + $0x780] sm:$0xff]  ;;  %v897_v9 = vld [vmem:[%s3509_s2 + $0x5e8] sm:$0xff]  ;;  %990 = vmatpush.msra.mxu3 %v915_v5 }
 0x2b7   :  { %1029 = vmatpush.msra.mxu0 %v927_v7 }
 0x2b8   :  { %v597_v54 = vadd.f32 %v596_v10, %v562_v53  ;;  %991 = vmatpush.msra.mxu3 %v914_v8  ;;  %v913_v10 = vld [vmem:[%s3509_s2 + $0x768] sm:$0xff]  ;;  %v896_v53 = vld [vmem:[%s3509_s2 + $0x5d0] sm:$0xff] }
 0x2ba   :  { %v606_v12 = vmax.f32 %v597_v54, 0.0  ;;  %1158 = vperm.xlu2 %2340, %v2547_v59   ;;  %v899_v59 = vld [vmem:[%s3509_s2 + $0x618] sm:$0xff]  ;;  %v926_v54 = vld [vmem:[%s3509_s2 + $0x8a0] sm:$0xff]  ;;  %992 = vmatpush.msra.mxu3 %v913_v10 }
 0x2bb   :  { %955 = vmatpush.msrb.mxu2 %v899_v59  ;;  %1030 = vmatpush.msra.mxu0 %v926_v54 }
 0x2bc   :  { %v529_v26 = vpop.f32.mrf.mxu2  ;;  %2221 = vmatmul.msk.f32.gmra.mxu1 %vm295_vm14, %v606_v12  ;;  %v912_v12 = vld [vmem:[%s3509_s2 + $0x750] sm:$0xff] }
 0x2bd   :  { %v530_v13 = vadd.f32 %v529_v26, %v477_v22  ;;  %956 = vmatpush.msrb.mxu2 %v898_v6  ;;  %v895_v26 = vld [vmem:[%s3509_s2 + $0x5b8] sm:$0xff]  ;;  %993 = vmatpush.msra.mxu3 %v912_v12 }
 0x2bf   :  { %v565_v32 = vadd.f32 %v564_v31, %v530_v13  ;;  %957 = vmatpush.msrb.mxu2 %v897_v9  ;;  %v911_v13 = vld [vmem:[%s3509_s2 + $0x738] sm:$0xff] }
 0x2c0   :  { %994 = vmatpush.msra.mxu3 %v911_v13 }
 0x2c1   :  { %v600_v16 = vadd.f32 %v599_v44, %v565_v32  ;;  %958 = vmatpush.msrb.mxu2 %v896_v53  ;;  %v910_v32 = vld [vmem:[%s3509_s2 + $0x720] sm:$0xff]  ;;  %v909_v44 = vld [vmem:[%s3509_s2 + $0x708] sm:$0xff] }
 0x2c2   :  { %1161 = vperm.xlu2 %2340, %v2556_v61   ;;  %995 = vmatpush.msra.mxu3 %v910_v32 }
 0x2c3   :  { %v607_v19 = vmax.f32 %v600_v16, 0.0  ;;  %959 = vmatpush.msrb.mxu2 %v895_v26  ;;  %v925_v16 = vld [vmem:[%s3509_s2 + $0x888] sm:$0xff] }
 0x2c4   :  { %v710_v23 = vpop.f32.mrf.mxu2  ;;  %996 = vmatpush.msra.mxu3 %v909_v44  ;;  %1031 = vmatpush.msra.mxu0 %v925_v16 }
 0x2c5   :  { %v711_v24 = vadd.f32 %v710_v23, %v668_v63  ;;  %2222 = vmatmul.msk.f32.gmra.mxu1 %vm295_vm14, %v607_v19  ;;  %v893_v19 = vld [vmem:[%s3509_s2 + $0x588] sm:$0xff]  ;;  %v908_v23 = vld [vmem:[%s3509_s2 + $0x6f0] sm:$0xff] }
 0x2c6   :  { %997 = vmatpush.msra.mxu3 %v908_v23 }
 0x2c7   :  { %v728_v27 = vmax.f32 %v711_v24, 0.0  ;;  %v907_v24 = vld [vmem:[%s3509_s2 + $0x6d8] sm:$0xff] }
 0x2c8   :  { %998 = vmatpush.msra.mxu3 %v907_v24 }
 0x2c9   :  { %2229 = vmatmul.msk.f32.vlgmr.msrb.gmra.mxu3 %vm295_vm14, %v728_v27  ;;  %2235 = vmatmul.msk.f32.vlgmr.msrb.gmra.mxu0 %vm295_vm14, %v728_v27 }
 0x2ca   :  { %1164 = vperm.xlu2 %2340, %v34_v46  }
 0x2cc   :  { %v713_v28 = vpop.f32.mrf.mxu2 }
 0x2cd   :  { %v714_v30 = vadd.f32 %v713_v28, %v668_v63  ;;  %2241 = vmatmul.msk.f32.vlgmr.msrb.gmra.mxu1 %vm295_vm14, %v728_v27  ;;  %v892_v28 = vld [vmem:[%s3509_s2 + $0x570] sm:$0xff] }
 0x2cf   :  { %v729_v22 = vmax.f32 %v714_v30, 0.0  ;;  %v924_v30 = vld [vmem:[%s3509_s2 + $0x870] sm:$0xff] }
 0x2d0   :  { %1032 = vmatpush.msra.mxu0 %v924_v30 }
 0x2d1   :  { %2230 = vmatmul.msk.f32.gmra.mxu3 %vm295_vm14, %v729_v22  ;;  %2236 = vmatmul.msk.f32.gmra.mxu0 %vm295_vm14, %v729_v22 }
 0x2d4   :  { %v716_v34 = vpop.f32.mrf.mxu2 }
 0x2d5   :  { %v717_v35 = vadd.f32 %v716_v34, %v668_v63  ;;  %2242 = vmatmul.msk.f32.gmra.mxu1 %vm295_vm14, %v729_v22  ;;  %v906_v22 = vld [vmem:[%s3509_s2 + $0x6c0] sm:$0xff]  ;;  %v923_v34 = vld [vmem:[%s3509_s2 + $0x858] sm:$0xff] }
 0x2d6   :  { %999 = vmatpush.msra.mxu3 %v906_v22  ;;  %1033 = vmatpush.msra.mxu0 %v923_v34 }
 0x2d7   :  { %v730_v36 = vmax.f32 %v717_v35, 0.0  ;;  %v891_v35 = vld [vmem:[%s3509_s2 + $0x558] sm:$0xff] }
 0x2d9   :  { %2231 = vmatmul.msk.f32.gmra.mxu3 %vm295_vm14, %v730_v36  ;;  %2237 = vmatmul.msk.f32.gmra.mxu0 %vm295_vm14, %v730_v36 }
 0x2dc   :  { %v719_v37 = vpop.f32.mrf.mxu2 }
 0x2dd   :  { %v720_v38 = vadd.f32 %v719_v37, %v668_v63  ;;  %2243 = vmatmul.msk.f32.gmra.mxu1 %vm295_vm14, %v730_v36  ;;  %v922_v36 = vld [vmem:[%s3509_s2 + $0x840] sm:$0xff] }
 0x2de   :  { %v890_v37 = vld [vmem:[%s3509_s2 + $0x540] sm:$0xff]  ;;  %1034 = vmatpush.msra.mxu0 %v922_v36 }
 0x2df   :  { %v731_v20 = vmax.f32 %v720_v38, 0.0  ;;  %v612_v38 = vperm.slane %v2610_v18, 3 }
 0x2e1   :  { %2232 = vmatmul.msk.f32.gmra.mxu3 %vm295_vm14, %v731_v20  ;;  %2238 = vmatmul.msk.f32.gmra.mxu0 %vm295_vm14, %v731_v20 }
 0x2e4   :  { %v722_v39 = vpop.f32.mrf.mxu2 }
 0x2e5   :  { %v723_v40 = vadd.f32 %v722_v39, %v668_v63  ;;  %2244 = vmatmul.msk.f32.gmra.mxu1 %vm295_vm14, %v731_v20 }
 0x2e7   :  { %v732_v41 = vmax.f32 %v723_v40, 0.0 }
 0x2e9   :  { %2233 = vmatmul.msk.f32.gmra.mxu3 %vm295_vm14, %v732_v41  ;;  %2239 = vmatmul.msk.f32.gmra.mxu0 %vm295_vm14, %v732_v41 }
 0x2ec   :  { %v725_v42 = vpop.f32.mrf.mxu2 }
 0x2ed   :  { %v726_v43 = vadd.f32 %v725_v42, %v668_v63  ;;  %2245 = vmatmul.msk.f32.gmra.mxu1 %vm295_vm14, %v732_v41  ;;  %v894_v63 = vld [vmem:[%s3509_s2 + $0x5a0] sm:$0xff] }
 0x2ee   :  { %960 = vmatpush.msrb.mxu2 %v894_v63 }
 0x2ef   :  { %v733_v45 = vmax.f32 %v726_v43, 0.0 }
 0x2f0   :  { %961 = vmatpush.msrb.mxu2 %v893_v19 }
 0x2f1   :  { %2234 = vmatmul.msk.f32.gmra.mxu3 %vm295_vm14, %v733_v45  ;;  %2240 = vmatmul.msk.f32.gmra.mxu0 %vm295_vm14, %v733_v45 }
 0x2f2   :  { %962 = vmatpush.msrb.mxu2 %v892_v28 }
 0x2f4   :  { %963 = vmatpush.msrb.mxu2 %v891_v35 }
 0x2f5   :  { %2246 = vmatmul.msk.f32.gmra.mxu1 %vm295_vm14, %v733_v45 }
 0x2f6   :  { %964 = vmatpush.msrb.mxu2 %v890_v37 }
 0x303   :  { %v1135_v12 = vpop.permute.xlu2 %1134 }
 0x304   :  { %vm1141_vm5 = vcmp.eq.s32.totalorder %v2443_v11, %v1135_v12 }
 0x305   :  { %v1147_v13 = vsel %vm1141_vm5, 1.0, %v2376_v14 }
 0x306   :  { %1189 = vxpose.xlu0.b32.end [12/12] (short) (narrow) %v1147_v13, 32 }
 0x319   :  { %v2978_v61 = vpop.f32.mrf.mxu1 }
 0x31a   :  { %v3068_v51 = vadd.f32 %v2978_v61, %v612_v38 }
 0x321   :  { %v651_v31 = vpop.f32.mrf.mxu1 }
 0x322   :  { %v3062_v56 = vadd.f32 %v651_v31, %v612_v38 }
 0x324   :  { %v2366_v2 = vpack.i.bf16 %v3068_v51, %v3062_v56 }
 0x329   :  { %v654_v27 = vpop.f32.mrf.mxu1 }
 0x32a   :  { %v3041_v39 = vadd.f32 %v654_v27, %v612_v38 }
 0x331   :  { %v657_v20 = vpop.f32.mrf.mxu1 }
 0x332   :  { %v3043_v40 = vadd.f32 %v657_v20, %v612_v38 }
 0x334   :  { %v2341_v41 = vpack.i.bf16 %v3041_v39, %v3043_v40 }
 0x336   :  { %2342 = vrot.lane.b32.xlu1 %v2341_v41, %s2377_s16 }
 0x339   :  { %v660_v42 = vpop.f32.mrf.mxu1 }
 0x33a   :  { %v3048_v45 = vadd.f32 %v660_v42, %v612_v38 }
 0x342   :  { %v663_v43 = vpop.f32.mrf.mxu1 }
 0x343   :  { %v3050_v46 = vadd.f32 %v663_v43, %v612_v38 }
 0x345   :  { %v2346_v48 = vpack.i.bf16 %v3048_v45, %v3050_v46 }
 0x346   :  { %v819_v49 = vpop.f32.mrf.mxu0 }
 0x347   :  { %v820_v50 = vadd.f32 %v819_v49, %v3053_v47  ;;  %2347 = vrot.lane.b32.xlu2 %v2346_v48, %s2377_s16 }
 0x349   :  { %v873_v58 = vmax.f32 %v820_v50, 0.0 }
 0x34a   :  { %v854_v60 = vpop.f32.mrf.mxu1 }
 0x34b   :  { %v855_v62 = vadd.f32 %v854_v60, %v3060_v55  ;;  %1000 = vmatmul.f32.vlgmr.msra.gmra.mxu3 %v873_v58 }
 0x34c   :  { %v784_v1 = vpop.f32.mrf.mxu3 }
 0x34d   :  { %v874_v3 = vmax.f32 %v855_v62, 0.0  ;;  %v785_v52 = vadd.f32 %v784_v1, %v3065_v57 }
 0x34e   :  { %v822_v4 = vpop.f32.mrf.mxu0 }
 0x34f   :  { %v872_v59 = vmax.f32 %v785_v52, 0.0  ;;  %v823_v5 = vadd.f32 %v822_v4, %v3053_v47  ;;  %2367 = vrot.lane.b32.xlu2 %v2366_v2, %s2377_s16  ;;  %2247 = vmatmul.msk.f32.vlgmr.msra.gmra.mxu0 %vm478_vm4, %v874_v3 }
 0x351   :  { %965 = vmatmul.f32.vlgmr.msrb.gmra.mxu2 %v872_v59  ;;  %v876_v18 = vmax.f32 %v823_v5, 0.0  ;;  %v1062_v5 = vld [vmem:[%s3509_s2 + $0x930] sm:$0xff] }
 0x352   :  { %v857_v6 = vpop.f32.mrf.mxu1 }
 0x353   :  { %v858_v7 = vadd.f32 %v857_v6, %v3060_v55  ;;  %1003 = vmatmul.f32.gmra.mxu3 %v876_v18 }
 0x354   :  { %v787_v8 = vpop.f32.mrf.mxu3 }
 0x355   :  { %v877_v9 = vmax.f32 %v858_v7, 0.0  ;;  %v788_v61 = vadd.f32 %v787_v8, %v3065_v57  ;;  %v2373_v7 = vld [vmem:[%s3510_s5] sm:$0xff] }
 0x356   :  { %v825_v10 = vpop.f32.mrf.mxu0  ;;  %v930_v8 = vperm.slane %v2373_v7, 6 }
 0x357   :  { %v826_v53 = vadd.f32 %v825_v10, %v3053_v47  ;;  %2248 = vmatmul.msk.f32.gmra.mxu0 %vm478_vm4, %v877_v9  ;;  %v875_v54 = vmax.f32 %v788_v61, 0.0 }
 0x359   :  { %968 = vmatmul.f32.gmra.mxu2 %v875_v54  ;;  %v879_v26 = vmax.f32 %v826_v53, 0.0 }
 0x35a   :  { %v860_v31 = vpop.f32.mrf.mxu1 }
 0x35b   :  { %v861_v32 = vadd.f32 %v860_v31, %v3060_v55  ;;  %1006 = vmatmul.f32.gmra.mxu3 %v879_v26 }
 0x35c   :  { %v790_v44 = vpop.f32.mrf.mxu3 }
 0x35d   :  { %v880_v63 = vmax.f32 %v861_v32, 0.0  ;;  %v791_v16 = vadd.f32 %v790_v44, %v3065_v57 }
 0x35e   :  { %v828_v19 = vpop.f32.mrf.mxu0 }
 0x35f   :  { %v829_v23 = vadd.f32 %v828_v19, %v3053_v47  ;;  %2249 = vmatmul.msk.f32.gmra.mxu0 %vm478_vm4, %v880_v63  ;;  %v878_v24 = vmax.f32 %v791_v16, 0.0 }
 0x361   :  { %v882_v27 = vmax.f32 %v829_v23, 0.0  ;;  %971 = vmatmul.f32.gmra.mxu2 %v878_v24 }
 0x362   :  { %v863_v28 = vpop.f32.mrf.mxu1 }
 0x363   :  { %v864_v30 = vadd.f32 %v863_v28, %v3060_v55  ;;  %1009 = vmatmul.f32.gmra.mxu3 %v882_v27 }
 0x364   :  { %v793_v22 = vpop.f32.mrf.mxu3 }
 0x365   :  { %v883_v34 = vmax.f32 %v864_v30, 0.0  ;;  %v794_v35 = vadd.f32 %v793_v22, %v3065_v57 }
 0x366   :  { %v831_v36 = vpop.f32.mrf.mxu0 }
 0x367   :  { %v832_v37 = vadd.f32 %v831_v36, %v3053_v47  ;;  %2250 = vmatmul.msk.f32.gmra.mxu0 %vm478_vm4, %v883_v34  ;;  %v881_v38 = vmax.f32 %v794_v35, 0.0 }
 0x369   :  { %v885_v20 = vmax.f32 %v832_v37, 0.0  ;;  %974 = vmatmul.f32.gmra.mxu2 %v881_v38 }
 0x36a   :  { %v866_v41 = vpop.f32.mrf.mxu1 }
 0x36b   :  { %v867_v42 = vadd.f32 %v866_v41, %v3060_v55  ;;  %1012 = vmatmul.f32.gmra.mxu3 %v885_v20 }
 0x36c   :  { %v796_v43 = vpop.f32.mrf.mxu3 }
 0x36d   :  { %v886_v48 = vmax.f32 %v867_v42, 0.0  ;;  %v797_v49 = vadd.f32 %v796_v43, %v3065_v57  ;;  %2371 = vset.pattern.permute.xlu0 %v2374_v0 }
 0x36e   :  { %v834_v50 = vpop.f32.mrf.mxu0 }
 0x36f   :  { %v835_v58 = vadd.f32 %v834_v50, %v3053_v47  ;;  %2251 = vmatmul.msk.f32.gmra.mxu0 %vm478_vm4, %v886_v48  ;;  %v884_v60 = vmax.f32 %v797_v49, 0.0  ;;  %v1063_v47 = vld [vmem:[%s3509_s2 + $0x948] sm:$0xff] }
 0x370   :  { %1095 = vmatpush.msra.mxu1 %v1063_v47 }
 0x371   :  { %v888_v62 = vmax.f32 %v835_v58, 0.0  ;;  %977 = vmatmul.f32.gmra.mxu2 %v884_v60 }
 0x372   :  { %v869_v1 = vpop.f32.mrf.mxu1  ;;  %1096 = vmatpush.msra.mxu1 %v1062_v5 }
 0x373   :  { %v870_v2 = vadd.f32 %v869_v1, %v3060_v55  ;;  %1015 = vmatmul.f32.gmra.mxu3 %v888_v62  ;;  %v1061_v55 = vld [vmem:[%s3509_s2 + $0x918] sm:$0xff] }
 0x374   :  { %v799_v3 = vpop.f32.mrf.mxu3  ;;  %1097 = vmatpush.msra.mxu1 %v1061_v55 }
 0x375   :  { %v889_v52 = vmax.f32 %v870_v2, 0.0  ;;  %v800_v4 = vadd.f32 %v799_v3, %v3065_v57  ;;  %v1060_v57 = vld [vmem:[%s3509_s2 + $0x900] sm:$0xff] }
 0x376   :  { %1098 = vmatpush.msra.mxu1 %v1060_v57 }
 0x377   :  { %2252 = vmatmul.msk.f32.gmra.mxu0 %vm478_vm4, %v889_v52  ;;  %v887_v59 = vmax.f32 %v800_v4, 0.0 }
 0x379   :  { %980 = vmatmul.f32.gmra.mxu2 %v887_v59  ;;  %v1064_v59 = vperm.slane %v2373_v7, 7  ;;  %v1194_v7 = vpop.trf.xlu0 }
 0x3cc   :  { %v1036_v18 = vpop.f32.mrf.mxu0 }
 0x3ce   :  { %v1001_v6 = vpop.f32.mrf.mxu3 }
 0x3d4   :  { %v966_v9 = vpop.f32.mrf.mxu2  ;;  %v1039_v54 = vpop.f32.mrf.mxu0 }
 0x3d5   :  { %v967_v61 = vadd.f32 %v966_v9, %v930_v8 }
 0x3d6   :  { %v1004_v10 = vpop.f32.mrf.mxu3 }
 0x3d7   :  { %v1002_v53 = vadd.f32 %v1001_v6, %v967_v61 }
 0x3d9   :  { %v1037_v12 = vadd.f32 %v1036_v18, %v1002_v53 }
 0x3db   :  { %v1054_v26 = vmax.f32 %v1037_v12, 0.0 }
 0x3dc   :  { %v969_v13 = vpop.f32.mrf.mxu2  ;;  %v1042_v63 = vpop.f32.mrf.mxu0 }
 0x3dd   :  { %v970_v31 = vadd.f32 %v969_v13, %v930_v8  ;;  %2253 = vmatmul.msk.f32.vlgmr.msra.gmra.mxu1 %vm295_vm14, %v1054_v26  ;;  %v1195_v13 = vpop.trf.xlu0 }
 0x3de   :  { %v1007_v0 = vpop.f32.mrf.mxu3 }
 0x3df   :  { %v1005_v32 = vadd.f32 %v1004_v10, %v970_v31 }
 0x3e1   :  { %v1040_v44 = vadd.f32 %v1039_v54, %v1005_v32 }
 0x3e3   :  { %v1055_v16 = vmax.f32 %v1040_v44, 0.0 }
 0x3e4   :  { %v972_v19 = vpop.f32.mrf.mxu2  ;;  %v1045_v22 = vpop.f32.mrf.mxu0 }
 0x3e5   :  { %v973_v23 = vadd.f32 %v972_v19, %v930_v8  ;;  %2254 = vmatmul.msk.f32.gmra.mxu1 %vm295_vm14, %v1055_v16  ;;  %v1196_v31 = vpop.trf.xlu0 }
 0x3e6   :  { %v1010_v28 = vpop.f32.mrf.mxu3 }
 0x3e7   :  { %v1008_v24 = vadd.f32 %v1007_v0, %v973_v23  ;;  %v1373_v23 = vld [vmem:[%s3511_s3] sm:$0xff] }
 0x3e9   :  { %v1043_v27 = vadd.f32 %v1042_v63, %v1008_v24 }
 0x3eb   :  { %v1056_v30 = vmax.f32 %v1043_v27, 0.0 }
 0x3ec   :  { %v975_v34 = vpop.f32.mrf.mxu2  ;;  %v1048_v43 = vpop.f32.mrf.mxu0 }
 0x3ed   :  { %v976_v35 = vadd.f32 %v975_v34, %v930_v8  ;;  %2255 = vmatmul.msk.f32.gmra.mxu1 %vm295_vm14, %v1056_v30 }
 0x3ee   :  { %v1013_v20 = vpop.f32.mrf.mxu3 }
 0x3ef   :  { %v1011_v36 = vadd.f32 %v1010_v28, %v976_v35 }
 0x3f1   :  { %v1046_v37 = vadd.f32 %v1045_v22, %v1011_v36 }
 0x3f3   :  { %v1057_v38 = vmax.f32 %v1046_v37, 0.0 }
 0x3f4   :  { %v978_v41 = vpop.f32.mrf.mxu2  ;;  %v1051_v2 = vpop.f32.mrf.mxu0 }
 0x3f5   :  { %v979_v42 = vadd.f32 %v978_v41, %v930_v8  ;;  %2256 = vmatmul.msk.f32.gmra.mxu1 %vm295_vm14, %v1057_v38 }
 0x3f6   :  { %v1016_v62 = vpop.f32.mrf.mxu3 }
 0x3f7   :  { %v1014_v48 = vadd.f32 %v1013_v20, %v979_v42 }
 0x3f9   :  { %v1049_v49 = vadd.f32 %v1048_v43, %v1014_v48 }
 0x3fb   :  { %v1058_v50 = vmax.f32 %v1049_v49, 0.0 }
 0x3fc   :  { %v981_v58 = vpop.f32.mrf.mxu2 }
 0x3fd   :  { %v982_v60 = vadd.f32 %v981_v58, %v930_v8  ;;  %2257 = vmatmul.msk.f32.gmra.mxu1 %vm295_vm14, %v1058_v50 }
 0x3ff   :  { %v1017_v1 = vadd.f32 %v1016_v62, %v982_v60 }
 0x401   :  { %v1052_v3 = vadd.f32 %v1051_v2, %v1017_v1 }
 0x403   :  { %v1059_v52 = vmax.f32 %v1052_v3, 0.0  ;;  %v1472_v3 = vld [vmem:[%s3511_s3 + $0x110] sm:$0xff] }
 0x404   :  { %1490 = vmatpush.msrb.mxu0 %v1472_v3  ;;  %v1687_v3 = vld [vmem:[%s3511_s3 + $0x210] sm:$0xff] }
 0x405   :  { %2258 = vmatmul.msk.f32.gmra.mxu1 %vm295_vm14, %v1059_v52  ;;  %v1471_v52 = vld [vmem:[%s3511_s3 + $0x100] sm:$0xff] }
 0x406   :  { %1491 = vmatpush.msrb.mxu0 %v1471_v52  ;;  %v1686_v52 = vld [vmem:[%s3511_s3 + $0x200] sm:$0xff] }
 0x45a   :  { %v1100_v4 = vpop.f32.mrf.mxu1 }
 0x45b   :  { %v1101_v5 = vadd.f32 %v1100_v4, %v1064_v59  ;;  %v1470_v4 = vld [vmem:[%s3511_s3 + $0xf0] sm:$0xff] }
 0x45c   :  { %1492 = vmatpush.msrb.mxu0 %v1470_v4  ;;  %v1685_v4 = vld [vmem:[%s3511_s3 + $0x1f0] sm:$0xff] }
 0x462   :  { %v1103_v47 = vpop.f32.mrf.mxu1 }
 0x463   :  { %v1104_v55 = vadd.f32 %v1103_v47, %v1064_v59  ;;  %v1468_v47 = vld [vmem:[%s3511_s3 + $0xd0] sm:$0xff] }
 0x465   :  { %v2351_v57 = vpack.i.bf16 %v1101_v5, %v1104_v55 }
 0x467   :  { %2352 = vrot.lane.b32.xlu1 %v2351_v57, %s2377_s16  ;;  %v1465_v57 = vld [vmem:[%s3511_s3 + $0xa0] sm:$0xff] }
 0x46a   :  { %v1106_v18 = vpop.f32.mrf.mxu1 }
 0x46b   :  { %v1107_v8 = vadd.f32 %v1106_v18, %v1064_v59  ;;  %v1464_v18 = vld [vmem:[%s3511_s3 + $0x90] sm:$0xff] }
 0x472   :  { %v1109_v6 = vpop.f32.mrf.mxu1 }
 0x473   :  { %v1110_v9 = vadd.f32 %v1109_v6, %v1064_v59  ;;  %v1463_v6 = vld [vmem:[%s3511_s3 + $0x80] sm:$0xff] }
 0x475   :  { %v2356_v61 = vpack.i.bf16 %v1107_v8, %v1110_v9 }
 0x477   :  { %2357 = vrot.lane.b32.xlu1 %v2356_v61, %s2377_s16  ;;  %v1460_v61 = vld [vmem:[%s3511_s3 + $0x50] sm:$0xff] }
 0x47a   :  { %v1112_v10 = vpop.f32.mrf.mxu1 }
 0x47b   :  { %v1113_v54 = vadd.f32 %v1112_v10, %v1064_v59  ;;  %v1459_v10 = vld [vmem:[%s3511_s3 + $0x40] sm:$0xff] }
 0x482   :  { %v1115_v53 = vpop.f32.mrf.mxu1 }
 0x483   :  { %v1116_v12 = vadd.f32 %v1115_v53, %v1064_v59  ;;  %v1469_v59 = vld [vmem:[%s3511_s3 + $0xe0] sm:$0xff]  ;;  %v1458_v53 = vld [vmem:[%s3511_s3 + $0x30] sm:$0xff] }
 0x484   :  { %1493 = vmatpush.msrb.mxu0 %v1469_v59  ;;  %v1684_v59 = vld [vmem:[%s3511_s3 + $0x1e0] sm:$0xff] }
 0x485   :  { %v2361_v26 = vpack.i.bf16 %v1113_v54, %v1116_v12  ;;  %1227 = vmatpush.msra.mxu2 %v1116_v12  ;;  %v3226_v12 = vld [vmem:[%s3510_s5 + $0x18] sm:$0xff] }
 0x486   :  { %1494 = vmatpush.msrb.mxu0 %v1468_v47  ;;  %v1683_v47 = vld [vmem:[%s3511_s3 + $0x1d0] sm:$0xff] }
 0x487   :  { %2362 = vrot.lane.b32.xlu1 %v2361_v26, %s2377_s16  ;;  %1228 = vmatpush.msra.mxu2 %v1113_v54  ;;  %v1457_v54 = vld [vmem:[%s3511_s3 + $0x20] sm:$0xff]  ;;  %v1476_v26 = vld [vmem:[%s3511_s3 + $0x150] sm:$0xff] }
 0x488   :  { %1531 = vmatpush.msrb.mxu1 %v1476_v26 }
 0x489   :  { %1229 = vmatpush.msra.mxu2 %v1110_v9  ;;  %v1461_v9 = vld [vmem:[%s3511_s3 + $0x60] sm:$0xff] }
 0x48b   :  { %1230 = vmatpush.msra.mxu2 %v1107_v8  ;;  %v1462_v8 = vld [vmem:[%s3511_s3 + $0x70] sm:$0xff] }
 0x48d   :  { %1231 = vmatpush.msra.mxu2 %v1104_v55  ;;  %v1466_v55 = vld [vmem:[%s3511_s3 + $0xb0] sm:$0xff] }
 0x48f   :  { %1232 = vmatpush.msra.mxu2 %v1101_v5  ;;  %v1467_v5 = vld [vmem:[%s3511_s3 + $0xc0] sm:$0xff] }
 0x490   :  { %1495 = vmatpush.msrb.mxu0 %v1467_v5  ;;  %v1682_v5 = vld [vmem:[%s3511_s3 + $0x1c0] sm:$0xff] }
 0x491   :  { %1233 = vmatpush.msra.mxu2 %v3050_v46  ;;  %v1197_v46 = vpop.trf.xlu0 }
 0x492   :  { %1496 = vmatpush.msrb.mxu0 %v1466_v55  ;;  %v1681_v55 = vld [vmem:[%s3511_s3 + $0x1b0] sm:$0xff] }
 0x493   :  { %1234 = vmatpush.msra.mxu2 %v3048_v45  ;;  %v1153_v45 = vpop.permute.xlu2 %1152 }
 0x494   :  { %vm1167_vm8 = vcmp.eq.s32.totalorder %v2443_v11, %v1153_v45  ;;  %1497 = vmatpush.msrb.mxu0 %v1465_v57  ;;  %v1680_v57 = vld [vmem:[%s3511_s3 + $0x1a0] sm:$0xff] }
 0x495   :  { %1235 = vmatpush.msra.mxu2 %v3043_v40 }
 0x496   :  { %1498 = vmatpush.msrb.mxu0 %v1464_v18  ;;  %v1553_v18 = vld [vmem:[%s3511_s3 + $0x170] sm:$0xff] }
 0x497   :  { %1236 = vmatpush.msra.mxu2 %v3041_v39  ;;  %v1150_v39 = vpop.permute.xlu1 %1149 }
 0x498   :  { %vm1166_vm7 = vcmp.eq.s32.totalorder %v2443_v11, %v1150_v39  ;;  %1499 = vmatpush.msrb.mxu0 %v1463_v6  ;;  %v1552_v6 = vld [vmem:[%s3511_s3 + $0x160] sm:$0xff] }
 0x499   :  { %1237 = vmatpush.msra.mxu2 %v3062_v56 }
 0x49a   :  { %1500 = vmatpush.msrb.mxu0 %v1462_v8  ;;  %v1600_v8 = vperm.slane %v3226_v12, 3 }
 0x49b   :  { %1238 = vmatpush.msra.mxu2 %v3068_v51  ;;  %v1159_v51 = vpop.permute.xlu2 %1158 }
 0x49c   :  { %2259 = vmatmul.msk.f32.vlgmr.msra.gmra.mxu2 %vm1210_vm6, %v1194_v7  ;;  %vm1169_vm10 = vcmp.eq.s32.totalorder %v2443_v11, %v1159_v51  ;;  %1501 = vmatpush.msrb.mxu0 %v1461_v9  ;;  %v1377_v7 = vperm.slane %v3226_v12, 0 }
 0x49d   :  { %v1175_v30 = vsel %vm1169_vm10, 1.0, %v2376_v14 }
 0x49e   :  { %1502 = vmatpush.msrb.mxu0 %v1460_v61 }
 0x49f   :  { %v1156_v40 = vpop.permute.xlu1 %1155 }
 0x4a0   :  { %vm1168_vm9 = vcmp.eq.s32.totalorder %v2443_v11, %v1156_v40  ;;  %1503 = vmatpush.msrb.mxu0 %v1459_v10 }
 0x4a1   :  { %v1174_v63 = vsel %vm1168_vm9, 1.0, %v2376_v14 }
 0x4a2   :  { %1504 = vmatpush.msrb.mxu0 %v1458_v53  ;;  %v1699_v53 = vld [vmem:[%s3511_s3 + $0x2d0] sm:$0xff] }
 0x4a4   :  { %2260 = vmatmul.msk.f32.gmra.mxu2 %vm1210_vm6, %v1195_v13  ;;  %1505 = vmatpush.msrb.mxu0 %v1457_v54  ;;  %v1598_v13 = vld [vmem:[%s3511_s3 + $0x190] sm:$0xff] }
 0x4a7   :  { %v2343_v56 = vpop.permute.xlu1 %2342 }
 0x4a8   :  { %v2344_v36 = vunpack.i.l.bf16 %v2343_v56  ;;  %v2345_v20 = vunpack.i.h.bf16 %v2343_v56 }
 0x4ac   :  { %2261 = vmatmul.msk.f32.gmra.mxu2 %vm1210_vm6, %v1196_v31  ;;  %v1599_v31 = vld [vmem:[%s3511_s3 + $0x198] sm:$0xff] }
 0x4ad   :  { %1657 = vmatpush.msra.mxu0 %v1599_v31 }
 0x4b4   :  { %2262 = vmatmul.msk.f32.gmra.mxu2 %vm1210_vm6, %v1197_v46 }
 0x4bc   :  { %1252 = vxpose.xlu1.b32.start [1/12] (short) (narrow) %v2447_v15, 32  ;;  %v1172_v15 = vsel %vm1166_vm7, 1.0, %v2376_v14 }
 0x4c4   :  { %1253 = vxpose.xlu1.b32.cont [2/12] (short) (narrow) %v2453_v17, 32  ;;  %v1162_v17 = vpop.permute.xlu2 %1161 }
 0x4c5   :  { %vm1170_vm11 = vcmp.eq.s32.totalorder %v2443_v11, %v1162_v17 }
 0x4c6   :  { %v1176_v37 = vsel %vm1170_vm11, 1.0, %v2376_v14 }
 0x4cc   :  { %1254 = vxpose.xlu1.b32.cont [3/12] (short) (narrow) %v2466_v21, 32  ;;  %v1173_v21 = vsel %vm1167_vm8, 1.0, %v2376_v14  ;;  %v1165_v0 = vpop.permute.xlu2 %1164 }
 0x4cd   :  { %vm1171_vm12 = vcmp.eq.s32.totalorder %v2443_v11, %v1165_v0  ;;  %v1376_v11 = vld [vmem:[%s3511_s3 + $0x18] sm:$0xff]  ;;  %v1596_v0 = vld [vmem:[%s3511_s3 + $0x180] sm:$0xff] }
 0x4ce   :  { %v1177_v43 = vsel %vm1171_vm12, 1.0, %v2376_v14  ;;  %v1374_v14 = vld [vmem:[%s3511_s3 + $0x8] sm:$0xff] }
 0x4d4   :  { %1255 = vxpose.xlu1.b32.cont [4/12] (short) (narrow) %v2478_v25, 32  ;;  %v2348_v27 = vpop.permute.xlu2 %2347 }
 0x4d5   :  { %v2349_v34 = vunpack.i.l.bf16 %v2348_v27  ;;  %v2350_v35 = vunpack.i.h.bf16 %v2348_v27 }
 0x4d9   :  { %v2353_v32 = vpop.permute.xlu1 %2352 }
 0x4da   :  { %v2354_v28 = vunpack.i.l.bf16 %v2353_v32  ;;  %v2355_v22 = vunpack.i.h.bf16 %v2353_v32 }
 0x4dc   :  { %1256 = vxpose.xlu1.b32.cont [5/12] (short) (narrow) %v2490_v29, 32  ;;  %v1375_v29 = vld [vmem:[%s3511_s3 + $0x10] sm:$0xff]  ;;  %v2368_v38 = vpop.permute.xlu2 %2367 }
 0x4dd   :  { %1405 = vmatpush.msrb.mxu2 %v1375_v29  ;;  %v2369_v41 = vunpack.i.l.bf16 %v2368_v38  ;;  %v2370_v42 = vunpack.i.h.bf16 %v2368_v38  ;;  %v1695_v38 = vld [vmem:[%s3511_s3 + $0x290] sm:$0xff] }
 0x4df   :  { %1406 = vmatpush.msrb.mxu2 %v1373_v23 }
 0x4e1   :  { %1581 = vmatpush.msra.mxu2 %v1553_v18 }
 0x4e3   :  { %1582 = vmatpush.msra.mxu2 %v1552_v6  ;;  %v1554_v6 = vperm.slane %v3226_v12, 2 }
 0x4e4   :  { %1257 = vxpose.xlu1.b32.cont [6/12] (short) (narrow) %v2502_v33, 32 }
 0x4e9   :  { %v2358_v25 = vpop.permute.xlu1 %2357 }
 0x4ea   :  { %v2359_v19 = vunpack.i.l.bf16 %v2358_v25  ;;  %v2360_v24 = vunpack.i.h.bf16 %v2358_v25 }
 0x4ec   :  { %1258 = vxpose.xlu1.b32.cont [7/12] (short) (narrow) %v1172_v15, 32 }
 0x4f4   :  { %1259 = vxpose.xlu1.b32.cont [8/12] (short) (narrow) %v1173_v21, 32 }
 0x4f9   :  { %v2363_v33 = vpop.permute.xlu1 %2362 }
 0x4fa   :  { %v2364_v44 = vunpack.i.l.bf16 %v2363_v33  ;;  %v2365_v16 = vunpack.i.h.bf16 %v2363_v33  ;;  %v1597_v33 = vld [vmem:[%s3511_s3 + $0x188] sm:$0xff] }
 0x4fb   :  { %1658 = vmatpush.msra.mxu0 %v1597_v33 }
 0x4fc   :  { %1260 = vxpose.xlu1.b32.cont [9/12] (short) (narrow) %v1174_v63, 32  ;;  %1348 = vmatpush.msrb.mxu3 %v2364_v44  ;;  %v1475_v44 = vld [vmem:[%s3511_s3 + $0x140] sm:$0xff]  ;;  %v1474_v63 = vld [vmem:[%s3511_s3 + $0x130] sm:$0xff] }
 0x4fd   :  { %1532 = vmatpush.msrb.mxu1 %v1475_v44 }
 0x4fe   :  { %1349 = vmatpush.msrb.mxu3 %v2365_v16  ;;  %v1473_v16 = vld [vmem:[%s3511_s3 + $0x120] sm:$0xff] }
 0x4ff   :  { %1533 = vmatpush.msrb.mxu1 %v1474_v63 }
 0x500   :  { %1350 = vmatpush.msrb.mxu3 %v2359_v19 }
 0x501   :  { %1534 = vmatpush.msrb.mxu1 %v1473_v16 }
 0x502   :  { %1351 = vmatpush.msrb.mxu3 %v2360_v24 }
 0x503   :  { %1713 = vmatpush.msra.mxu1 %v1695_v38 }
 0x504   :  { %1261 = vxpose.xlu1.b32.cont [10/12] (short) (narrow) %v1175_v30, 32  ;;  %1352 = vmatpush.msrb.mxu3 %v2354_v28  ;;  %v3264_v28 = vld [vmem:[%s3510_s5 + $0x20] sm:$0xff] }
 0x505   :  { %v1378_v30 = vperm.slane %v3264_v28, 0 }
 0x506   :  { %1353 = vmatpush.msrb.mxu3 %v2355_v22 }
 0x508   :  { %1354 = vmatpush.msrb.mxu3 %v2349_v34 }
 0x50a   :  { %1355 = vmatpush.msrb.mxu3 %v2350_v35 }
 0x50c   :  { %1262 = vxpose.xlu1.b32.cont [11/12] (short) (narrow) %v1176_v37, 32  ;;  %1356 = vmatpush.msrb.mxu3 %v2344_v36 }
 0x50e   :  { %1357 = vmatpush.msrb.mxu3 %v2345_v20 }
 0x510   :  { %1358 = vmatpush.msrb.mxu3 %v2369_v41  ;;  %v1694_v41 = vld [vmem:[%s3511_s3 + $0x280] sm:$0xff] }
 0x511   :  { %1714 = vmatpush.msra.mxu1 %v1694_v41 }
 0x512   :  { %1359 = vmatpush.msrb.mxu3 %v2370_v42 }
 0x514   :  { %1263 = vxpose.xlu1.b32.end [12/12] (short) (narrow) %v1177_v43, 32  ;;  %1434 = vmatpush.msra.mxu3 %v1376_v11  ;;  %v1690_v11 = vld [vmem:[%s3511_s3 + $0x240] sm:$0xff] }
 0x516   :  { %1435 = vmatpush.msra.mxu3 %v1374_v14 }
 0x51f   :  { %v1240_v48 = vpop.f32.mrf.mxu2 }
 0x520   :  { %2267 = vmatmul.msk.f32.vlgmr.msrb.gmra.mxu2 %vm105_vm0, %v1240_v48 }
 0x521   :  { %1754 = vmatpush.msrb.mxu2 %v1699_v53 }
 0x527   :  { %v1243_v49 = vpop.f32.mrf.mxu2 }
 0x528   :  { %2268 = vmatmul.msk.f32.gmra.mxu2 %vm105_vm0, %v1243_v49 }
 0x52f   :  { %v1246_v50 = vpop.f32.mrf.mxu2 }
 0x530   :  { %2269 = vmatmul.msk.f32.gmra.mxu2 %vm105_vm0, %v1246_v50 }
 0x537   :  { %v1249_v58 = vpop.f32.mrf.mxu2 }
 0x538   :  { %2270 = vmatmul.msk.f32.gmra.mxu2 %vm105_vm0, %v1249_v58 }
 0x560   :  { %v1268_v60 = vpop.trf.xlu1 }
 0x561   :  { %2263 = vmatmul.msk.f32.vlgmr.msrb.gmra.mxu3 %vm1210_vm6, %v1268_v60 }
 0x562   :  { %1628 = vmatpush.msrb.mxu3 %v1598_v13  ;;  %v1698_v13 = vld [vmem:[%s3511_s3 + $0x2c0] sm:$0xff] }
 0x563   :  { %1755 = vmatpush.msrb.mxu2 %v1698_v13  ;;  %v1820_v13 = vld [vmem:[%s3512_s4 + $0x8] sm:$0xff] }
 0x564   :  { %1629 = vmatpush.msrb.mxu3 %v1596_v0 }
 0x568   :  { %v1269_v62 = vpop.trf.xlu1 }
 0x569   :  { %2264 = vmatmul.msk.f32.gmra.mxu3 %vm1210_vm6, %v1269_v62  ;;  %v1689_v62 = vld [vmem:[%s3511_s3 + $0x230] sm:$0xff] }
 0x570   :  { %v1270_v1 = vpop.trf.xlu1 }
 0x571   :  { %2265 = vmatmul.msk.f32.gmra.mxu3 %vm1210_vm6, %v1270_v1 }
 0x578   :  { %v1271_v2 = vpop.trf.xlu1 }
 0x579   :  { %2266 = vmatmul.msk.f32.gmra.mxu3 %vm1210_vm6, %v1271_v2  ;;  %v1688_v2 = vld [vmem:[%s3511_s3 + $0x220] sm:$0xff] }
 0x581   :  { %2271 = vmatmul.msk.f32.vlgmr.msra.gmra.mxu3 %vm105_vm0, %v1240_v48  ;;  %v1693_v48 = vld [vmem:[%s3511_s3 + $0x270] sm:$0xff] }
 0x582   :  { %1715 = vmatpush.msra.mxu1 %v1693_v48 }
 0x589   :  { %2272 = vmatmul.msk.f32.gmra.mxu3 %vm105_vm0, %v1243_v49 }
 0x591   :  { %2273 = vmatmul.msk.f32.gmra.mxu3 %vm105_vm0, %v1246_v50  ;;  %v1692_v50 = vld [vmem:[%s3511_s3 + $0x260] sm:$0xff] }
 0x592   :  { %1716 = vmatpush.msra.mxu1 %v1692_v50 }
 0x599   :  { %2274 = vmatmul.msk.f32.gmra.mxu3 %vm105_vm0, %v1249_v58  ;;  %v1691_v58 = vld [vmem:[%s3511_s3 + $0x250] sm:$0xff] }
 0x59a   :  { %1717 = vmatpush.msra.mxu1 %v1691_v58 }
 0x59c   :  { %1718 = vmatpush.msra.mxu1 %v1690_v11 }
 0x59e   :  { %1719 = vmatpush.msra.mxu1 %v1689_v62 }
 0x5a0   :  { %1720 = vmatpush.msra.mxu1 %v1688_v2  ;;  %v1776_v2 = vld [vmem:[%s3511_s3 + $0x2f0] sm:$0xff] }
 0x5a1   :  { %1804 = vmatpush.msra.mxu3 %v1776_v2 }
 0x5a2   :  { %1721 = vmatpush.msra.mxu1 %v1687_v3  ;;  %v1825_v3 = vld [vmem:[%s3512_s4 + $0x30] sm:$0xff] }
 0x5a3   :  { %v1408_v46 = vpop.f32.mrf.mxu2 }
 0x5a4   :  { %v1409_v39 = vadd.f32 %v1408_v46, %v1377_v7  ;;  %1722 = vmatpush.msra.mxu1 %v1686_v52  ;;  %v1823_v52 = vld [vmem:[%s3512_s4 + $0x20] sm:$0xff] }
 0x5a6   :  { %v1449_v40 = vmax.f32 %v1409_v39, 0.0  ;;  %1723 = vmatpush.msra.mxu1 %v1685_v4  ;;  %v1775_v4 = vld [vmem:[%s3511_s3 + $0x2e0] sm:$0xff] }
 0x5a7   :  { %1805 = vmatpush.msra.mxu3 %v1775_v4  ;;  %v2069_v4 = vld [vmem:[%s3512_s4 + $0x100] sm:$0xff] }
 0x5a8   :  { %1506 = vmatmul.f32.vlgmr.msrb.gmra.mxu0 %v1449_v40  ;;  %1724 = vmatpush.msra.mxu1 %v1684_v59  ;;  %v1821_v59 = vld [vmem:[%s3512_s4 + $0x10] sm:$0xff] }
 0x5a9   :  { %1847 = vmatpush.msrb.mxu0 %v1825_v3 }
 0x5aa   :  { %1725 = vmatpush.msra.mxu1 %v1683_v47  ;;  %v1819_v47 = vld [vmem:[%s3512_s4] sm:$0xff] }
 0x5ab   :  { %v1411_v45 = vpop.f32.mrf.mxu2  ;;  %1848 = vmatpush.msrb.mxu0 %v1823_v52 }
 0x5ac   :  { %v1412_v56 = vadd.f32 %v1411_v45, %v1377_v7  ;;  %1726 = vmatpush.msra.mxu1 %v1682_v5  ;;  %v1697_v45 = vld [vmem:[%s3511_s3 + $0x2b0] sm:$0xff] }
 0x5ad   :  { %1756 = vmatpush.msrb.mxu2 %v1697_v45 }
 0x5ae   :  { %v1451_v51 = vmax.f32 %v1412_v56, 0.0  ;;  %1727 = vmatpush.msra.mxu1 %v1681_v55  ;;  %v1826_v55 = vld [vmem:[%s3512_s4 + $0x38] sm:$0xff] }
 0x5b0   :  { %1509 = vmatmul.f32.gmra.mxu0 %v1451_v51  ;;  %1728 = vmatpush.msra.mxu1 %v1680_v57  ;;  %v1477_v51 = vperm.slane %v3226_v12, 1  ;;  %v1824_v57 = vld [vmem:[%s3512_s4 + $0x28] sm:$0xff] }
 0x5b3   :  { %v1414_v32 = vpop.f32.mrf.mxu2 }
 0x5b4   :  { %v1415_v15 = vadd.f32 %v1414_v32, %v1377_v7 }
 0x5b6   :  { %v1453_v17 = vmax.f32 %v1415_v15, 0.0 }
 0x5b8   :  { %1512 = vmatmul.f32.gmra.mxu0 %v1453_v17 }
 0x5bb   :  { %v1417_v21 = vpop.f32.mrf.mxu2 }
 0x5bc   :  { %v1418_v25 = vadd.f32 %v1417_v21, %v1377_v7 }
 0x5be   :  { %v1455_v29 = vmax.f32 %v1418_v25, 0.0  ;;  %v1696_v25 = vld [vmem:[%s3511_s3 + $0x2a0] sm:$0xff] }
 0x5bf   :  { %1757 = vmatpush.msrb.mxu2 %v1696_v25 }
 0x5c0   :  { %1515 = vmatmul.f32.gmra.mxu0 %v1455_v29 }
 0x5e4   :  { %v1361_v19 = vpop.f32.mrf.mxu3 }
 0x5e5   :  { %2283 = vmatmul.msk.f32.vlgmr.msrb.gmra.mxu3 %vm105_vm0, %v1361_v19  ;;  %2287 = vmatmul.msk.f32.vlgmr.msra.gmra.mxu0 %vm105_vm0, %v1361_v19 }
 0x5e6   :  { %1899 = vmatpush.msra.mxu0 %v1821_v59  ;;  %v2068_v59 = vld [vmem:[%s3512_s4 + $0xf0] sm:$0xff] }
 0x5e8   :  { %1900 = vmatpush.msra.mxu0 %v1819_v47  ;;  %v2080_v47 = vld [vmem:[%s3512_s4 + $0x1b0] sm:$0xff] }
 0x5ec   :  { %v1364_v23 = vpop.f32.mrf.mxu3 }
 0x5ed   :  { %2284 = vmatmul.msk.f32.gmra.mxu3 %vm105_vm0, %v1364_v23  ;;  %2288 = vmatmul.msk.f32.gmra.mxu0 %vm105_vm0, %v1364_v23 }
 0x5f4   :  { %v1367_v24 = vpop.f32.mrf.mxu3 }
 0x5f5   :  { %2285 = vmatmul.msk.f32.gmra.mxu3 %vm105_vm0, %v1367_v24  ;;  %2289 = vmatmul.msk.f32.gmra.mxu0 %vm105_vm0, %v1367_v24 }
 0x5fc   :  { %v1370_v27 = vpop.f32.mrf.mxu3 }
 0x5fd   :  { %2286 = vmatmul.msk.f32.gmra.mxu3 %vm105_vm0, %v1370_v27  ;;  %2290 = vmatmul.msk.f32.gmra.mxu0 %vm105_vm0, %v1370_v27 }
 0x604   :  { %v1437_v22 = vpop.f32.mrf.mxu3 }
 0x605   :  { %v1438_v34 = vadd.f32 %v1437_v22, %v1378_v30 }
 0x607   :  { %v1450_v35 = vmax.f32 %v1438_v34, 0.0 }
 0x609   :  { %2275 = vmatmul.msk.f32.vlgmr.msrb.gmra.mxu1 %vm295_vm14, %v1450_v35 }
 0x60a   :  { %2321 = vmatpush.msrb.mxu1 %v1825_v3 }
 0x60c   :  { %v1440_v36 = vpop.f32.mrf.mxu3  ;;  %2322 = vmatpush.msrb.mxu1 %v1823_v52 }
 0x60d   :  { %v1441_v37 = vadd.f32 %v1440_v36, %v1378_v30 }
 0x60f   :  { %v1452_v20 = vmax.f32 %v1441_v37, 0.0 }
 0x611   :  { %2276 = vmatmul.msk.f32.gmra.mxu1 %vm295_vm14, %v1452_v20  ;;  %v1601_v20 = vperm.slane %v3264_v28, 3 }
 0x614   :  { %v1443_v42 = vpop.f32.mrf.mxu3 }
 0x615   :  { %v1444_v43 = vadd.f32 %v1443_v42, %v1378_v30 }
 0x617   :  { %v1454_v49 = vmax.f32 %v1444_v43, 0.0 }
 0x619   :  { %2277 = vmatmul.msk.f32.gmra.mxu1 %vm295_vm14, %v1454_v49 }
 0x61c   :  { %v1446_v14 = vpop.f32.mrf.mxu3 }
 0x61d   :  { %v1447_v60 = vadd.f32 %v1446_v14, %v1378_v30 }
 0x61f   :  { %v1456_v1 = vmax.f32 %v1447_v60, 0.0 }
 0x621   :  { %2278 = vmatmul.msk.f32.gmra.mxu1 %vm295_vm14, %v1456_v1 }
 0x625   :  { %v1507_v31 = vpop.f32.mrf.mxu0 }
 0x626   :  { %v1508_v17 = vadd.f32 %v1507_v31, %v1477_v51 }
 0x62d   :  { %v1510_v56 = vpop.f32.mrf.mxu0 }
 0x62e   :  { %v1511_v63 = vadd.f32 %v1510_v56, %v1477_v51 }
 0x635   :  { %v1513_v33 = vpop.f32.mrf.mxu0 }
 0x636   :  { %v1514_v27 = vadd.f32 %v1513_v33, %v1477_v51 }
 0x63d   :  { %v1516_v24 = vpop.f32.mrf.mxu0 }
 0x63e   :  { %v1517_v35 = vadd.f32 %v1516_v24, %v1477_v51  ;;  %v1933_v24 = vld [vmem:[%s3512_s4 + $0x50] sm:$0xff] }
 0x662   :  { %v1660_v36 = vpop.f32.mrf.mxu0 }
 0x663   :  { %v1661_v42 = vadd.f32 %v1660_v36, %v1601_v20  ;;  %v1991_v36 = vld [vmem:[%s3512_s4 + $0x60] sm:$0xff] }
 0x665   :  { %v1673_v48 = vmax.f32 %v1661_v42, 0.0  ;;  %v2074_v42 = vld [vmem:[%s3512_s4 + $0x150] sm:$0xff] }
 0x668   :  { %v1631_v9 = vpop.f32.mrf.mxu3 }
 0x669   :  { %v1632_v61 = vadd.f32 %v1631_v9, %v1600_v8 }
 0x66a   :  { %v1663_v43 = vpop.f32.mrf.mxu0 }
 0x66b   :  { %v1672_v10 = vmax.f32 %v1632_v61, 0.0  ;;  %v1664_v49 = vadd.f32 %v1663_v43, %v1601_v20  ;;  %v2073_v43 = vld [vmem:[%s3512_s4 + $0x140] sm:$0xff] }
 0x66d   :  { %1729 = vmatmul.f32.vlgmr.msra.gmra.mxu1 %v1672_v10  ;;  %v1675_v58 = vmax.f32 %v1664_v49, 0.0 }
 0x66e   :  { %1870 = vmatpush.msra.mxu1 %v1826_v55  ;;  %v2079_v55 = vld [vmem:[%s3512_s4 + $0x1a0] sm:$0xff] }
 0x670   :  { %v1634_v54 = vpop.f32.mrf.mxu3  ;;  %1871 = vmatpush.msra.mxu1 %v1824_v57 }
 0x671   :  { %v1635_v26 = vadd.f32 %v1634_v54, %v1600_v8 }
 0x672   :  { %v1666_v50 = vpop.f32.mrf.mxu0 }
 0x673   :  { %v1674_v7 = vmax.f32 %v1635_v26, 0.0  ;;  %v1667_v11 = vadd.f32 %v1666_v50, %v1601_v20  ;;  %v1822_v26 = vld [vmem:[%s3512_s4 + $0x18] sm:$0xff]  ;;  %v2072_v50 = vld [vmem:[%s3512_s4 + $0x130] sm:$0xff] }
 0x675   :  { %1732 = vmatmul.f32.gmra.mxu1 %v1674_v7  ;;  %v1677_v14 = vmax.f32 %v1667_v11, 0.0  ;;  %v1700_v7 = vperm.slane %v3226_v12, 4  ;;  %v2070_v11 = vld [vmem:[%s3512_s4 + $0x110] sm:$0xff] }
 0x678   :  { %v1637_v46 = vpop.f32.mrf.mxu3 }
 0x679   :  { %v1638_v39 = vadd.f32 %v1637_v46, %v1600_v8 }
 0x67a   :  { %v1669_v60 = vpop.f32.mrf.mxu0 }
 0x67b   :  { %v1676_v40 = vmax.f32 %v1638_v39, 0.0  ;;  %v1670_v62 = vadd.f32 %v1669_v60, %v1601_v20  ;;  %v2075_v20 = vld [vmem:[%s3512_s4 + $0x160] sm:$0xff] }
 0x67d   :  { %1735 = vmatmul.f32.gmra.mxu1 %v1676_v40  ;;  %v1679_v1 = vmax.f32 %v1670_v62, 0.0 }
 0x680   :  { %v1640_v32 = vpop.f32.mrf.mxu3 }
 0x681   :  { %v1641_v15 = vadd.f32 %v1640_v32, %v1600_v8 }
 0x683   :  { %v1678_v21 = vmax.f32 %v1641_v15, 0.0 }
 0x685   :  { %1738 = vmatmul.f32.gmra.mxu1 %v1678_v21 }
 0x686   :  { %v1536_v29 = vpop.f32.mrf.mxu1 }
 0x687   :  { %v1537_v0 = vadd.f32 %v1536_v29, %v1508_v17 }
 0x689   :  { %v1548_v44 = vmax.f32 %v1537_v0, 0.0 }
 0x68b   :  { %2279 = vmatmul.msk.f32.vlgmr.msra.gmra.mxu2 %vm105_vm0, %v1548_v44 }
 0x68c   :  { %1955 = vmatpush.msra.mxu2 %v1933_v24 }
 0x68e   :  { %v1539_v16 = vpop.f32.mrf.mxu1 }
 0x68f   :  { %v1540_v19 = vadd.f32 %v1539_v16, %v1511_v63 }
 0x691   :  { %v1549_v23 = vmax.f32 %v1540_v19, 0.0 }
 0x693   :  { %2280 = vmatmul.msk.f32.gmra.mxu2 %vm105_vm0, %v1549_v23 }
 0x696   :  { %v1542_v30 = vpop.f32.mrf.mxu1 }
 0x697   :  { %v1543_v22 = vadd.f32 %v1542_v30, %v1514_v27  ;;  %v1934_v27 = vld [vmem:[%s3512_s4 + $0x58] sm:$0xff]  ;;  %v1931_v30 = vld [vmem:[%s3512_s4 + $0x40] sm:$0xff] }
 0x698   :  { %1978 = vmatpush.msrb.mxu3 %v1934_v27  ;;  %1956 = vmatpush.msra.mxu2 %v1931_v30 }
 0x699   :  { %v1550_v34 = vmax.f32 %v1543_v22, 0.0  ;;  %v1932_v22 = vld [vmem:[%s3512_s4 + $0x48] sm:$0xff] }
 0x69a   :  { %1979 = vmatpush.msrb.mxu3 %v1932_v22 }
 0x69b   :  { %2281 = vmatmul.msk.f32.gmra.mxu2 %vm105_vm0, %v1550_v34  ;;  %v1993_v34 = vld [vmem:[%s3512_s4 + $0x70] sm:$0xff] }
 0x69e   :  { %v1545_v37 = vpop.f32.mrf.mxu1 }
 0x69f   :  { %v1546_v38 = vadd.f32 %v1545_v37, %v1517_v35  ;;  %v1994_v35 = vld [vmem:[%s3512_s4 + $0x78] sm:$0xff]  ;;  %v1992_v37 = vld [vmem:[%s3512_s4 + $0x68] sm:$0xff] }
 0x6a1   :  { %v1551_v41 = vmax.f32 %v1546_v38, 0.0  ;;  %v2076_v38 = vld [vmem:[%s3512_s4 + $0x170] sm:$0xff] }
 0x6a3   :  { %2282 = vmatmul.msk.f32.gmra.mxu2 %vm105_vm0, %v1551_v41  ;;  %v1777_v41 = vperm.slane %v3226_v12, 5 }
 0x6ab   :  { %2291 = vmatmul.msk.f32.vlgmr.msrb.gmra.mxu2 %vm295_vm14, %v1673_v48 }
 0x6ac   :  { %2088 = vmatpush.msrb.mxu2 %v2076_v38 }
 0x6ae   :  { %2089 = vmatpush.msrb.mxu2 %v2075_v20 }
 0x6b0   :  { %2090 = vmatpush.msrb.mxu2 %v2074_v42 }
 0x6b2   :  { %2091 = vmatpush.msrb.mxu2 %v2073_v43 }
 0x6b3   :  { %2292 = vmatmul.msk.f32.gmra.mxu2 %vm295_vm14, %v1675_v58  ;;  %v2071_v58 = vld [vmem:[%s3512_s4 + $0x120] sm:$0xff] }
 0x6b4   :  { %2092 = vmatpush.msrb.mxu2 %v2072_v50 }
 0x6b6   :  { %2093 = vmatpush.msrb.mxu2 %v2071_v58 }
 0x6b8   :  { %2094 = vmatpush.msrb.mxu2 %v2070_v11 }
 0x6ba   :  { %2095 = vmatpush.msrb.mxu2 %v2069_v4  ;;  %v2372_v4 = vld [vmem:[%s3510_s5 + $0x30] ss:$0 sm:$0xff] }
 0x6bb   :  { %2293 = vmatmul.msk.f32.gmra.mxu2 %vm295_vm14, %v1677_v14 }
 0x6bc   :  { %2096 = vmatpush.msrb.mxu2 %v2068_v59 }
 0x6c3   :  { %2294 = vmatmul.msk.f32.gmra.mxu2 %vm295_vm14, %v1679_v1 }
 0x6ea   :  { %v1730_v61 = vpop.f32.mrf.mxu1 }
 0x6eb   :  { %v1731_v31 = vadd.f32 %v1730_v61, %v1700_v7 }
 0x6f2   :  { %v1733_v46 = vpop.f32.mrf.mxu1 }
 0x6f3   :  { %v1734_v51 = vadd.f32 %v1733_v46, %v1700_v7  ;;  %v2137_v46 = vld [vmem:[%s3512_s4 + $0x1d0] sm:$0xff] }
 0x6fa   :  { %v1736_v17 = vpop.f32.mrf.mxu1 }
 0x6fb   :  { %v1737_v25 = vadd.f32 %v1736_v17, %v1700_v7 }
 0x702   :  { %v1739_v44 = vpop.f32.mrf.mxu1 }
 0x703   :  { %v1740_v63 = vadd.f32 %v1739_v44, %v1700_v7  ;;  %v2061_v7 = vld [vmem:[%s3512_s4 + $0x80] sm:$0xff] }
 0x70e   :  { %v1584_v5 = vpop.f32.mrf.mxu2 }
 0x70f   :  { %v1585_v53 = vadd.f32 %v1584_v5, %v1554_v6  ;;  %v2067_v5 = vld [vmem:[%s3512_s4 + $0xe0] sm:$0xff] }
 0x710   :  { %2097 = vmatpush.msrb.mxu2 %v2067_v5 }
 0x716   :  { %v1587_v18 = vpop.f32.mrf.mxu2 }
 0x717   :  { %v1588_v40 = vadd.f32 %v1587_v18, %v1554_v6  ;;  %v2066_v18 = vld [vmem:[%s3512_s4 + $0xd0] sm:$0xff] }
 0x718   :  { %2098 = vmatpush.msrb.mxu2 %v2066_v18 }
 0x71e   :  { %v1590_v8 = vpop.f32.mrf.mxu2 }
 0x71f   :  { %v1591_v9 = vadd.f32 %v1590_v8, %v1554_v6  ;;  %v2064_v8 = vld [vmem:[%s3512_s4 + $0xb0] sm:$0xff] }
 0x721   :  { %2299 = vmatmul.msk.f32.vlgmr.msrb.gmra.mxu0 %vm105_vm0, %v1591_v9 }
 0x722   :  { %2015 = vmatpush.msrb.mxu0 %v1993_v34 }
 0x724   :  { %2016 = vmatpush.msrb.mxu0 %v1991_v36 }
 0x726   :  { %v1593_v10 = vpop.f32.mrf.mxu2 }
 0x727   :  { %v1594_v54 = vadd.f32 %v1593_v10, %v1554_v6  ;;  %v2065_v6 = vld [vmem:[%s3512_s4 + $0xc0] sm:$0xff] }
 0x728   :  { %2099 = vmatpush.msrb.mxu2 %v2065_v6 }
 0x729   :  { %2300 = vmatmul.msk.f32.vlgmr.msrb.gmra.mxu1 %vm105_vm0, %v1594_v54  ;;  %2303 = vmatmul.msk.f32.vlgmr.msra.gmra.mxu0 %vm105_vm0, %v1585_v53 }
 0x72a   :  { %1922 = vmatpush.msrb.mxu1 %v1822_v26  ;;  %2100 = vmatpush.msrb.mxu2 %v2064_v8  ;;  %v2077_v26 = vld [vmem:[%s3512_s4 + $0x180] sm:$0xff] }
 0x72b   :  { %2159 = vmatpush.msra.mxu0 %v2137_v46 }
 0x72c   :  { %1923 = vmatpush.msrb.mxu1 %v1820_v13 }
 0x72e   :  { %v1759_v39 = vpop.f32.mrf.mxu2 }
 0x72f   :  { %v1760_v45 = vadd.f32 %v1759_v39, %v1731_v31  ;;  %v2136_v39 = vld [vmem:[%s3512_s4 + $0x1c0] sm:$0xff] }
 0x730   :  { %2160 = vmatpush.msra.mxu0 %v2136_v39 }
 0x731   :  { %v1771_v56 = vmax.f32 %v1760_v45, 0.0  ;;  %2301 = vmatmul.msk.f32.vlgmr.msra.gmra.mxu1 %vm105_vm0, %v1591_v9  ;;  %2304 = vmatmul.msk.f32.gmra.mxu0 %vm105_vm0, %v1588_v40  ;;  %v2063_v9 = vld [vmem:[%s3512_s4 + $0xa0] sm:$0xff] }
 0x732   :  { %2038 = vmatpush.msra.mxu1 %v1994_v35  ;;  %2101 = vmatpush.msrb.mxu2 %v2063_v9 }
 0x733   :  { %2295 = vmatmul.msk.f32.vlgmr.msra.gmra.mxu3 %vm105_vm0, %v1771_v56 }
 0x734   :  { %2039 = vmatpush.msra.mxu1 %v1992_v37  ;;  %2123 = vmatpush.msra.mxu3 %v2080_v47 }
 0x736   :  { %v1762_v32 = vpop.f32.mrf.mxu2  ;;  %2124 = vmatpush.msra.mxu3 %v2079_v55 }
 0x737   :  { %v1763_v15 = vadd.f32 %v1762_v32, %v1734_v51 }
 0x739   :  { %v1772_v21 = vmax.f32 %v1763_v15, 0.0  ;;  %2302 = vmatmul.msk.f32.gmra.mxu1 %vm105_vm0, %v1594_v54  ;;  %v2062_v54 = vld [vmem:[%s3512_s4 + $0x90] sm:$0xff] }
 0x73a   :  { %2102 = vmatpush.msrb.mxu2 %v2062_v54 }
 0x73b   :  { %2296 = vmatmul.msk.f32.gmra.mxu3 %vm105_vm0, %v1772_v21 }
 0x73c   :  { %2103 = vmatpush.msrb.mxu2 %v2061_v7 }
 0x73e   :  { %v1765_v29 = vpop.f32.mrf.mxu2 }
 0x73f   :  { %v1766_v0 = vadd.f32 %v1765_v29, %v1737_v25  ;;  %v2051_v25 = vperm.slane %v3226_v12, 6  ;;  %v2052_v29 = vperm.slane %v3264_v28, 6 }
 0x741   :  { %v1773_v33 = vmax.f32 %v1766_v0, 0.0  ;;  %2305 = vmatmul.msk.f32.vlgmr.msrb.gmra.mxu1 %vm105_vm0, %v1585_v53  ;;  %v2078_v53 = vld [vmem:[%s3512_s4 + $0x190] sm:$0xff] }
 0x742   :  { %2125 = vmatpush.msra.mxu3 %v2078_v53 }
 0x743   :  { %2297 = vmatmul.msk.f32.gmra.mxu3 %vm105_vm0, %v1773_v33 }
 0x744   :  { %2126 = vmatpush.msra.mxu3 %v2077_v26 }
 0x746   :  { %v1768_v16 = vpop.f32.mrf.mxu2 }
 0x747   :  { %v1769_v19 = vadd.f32 %v1768_v16, %v1740_v63 }
 0x749   :  { %v1774_v23 = vmax.f32 %v1769_v19, 0.0  ;;  %2306 = vmatmul.msk.f32.gmra.mxu1 %vm105_vm0, %v1588_v40 }
 0x74b   :  { %2298 = vmatmul.msk.f32.gmra.mxu3 %vm105_vm0, %v1774_v23 }
 0x79e   :  { %v1850_v61 = vpop.f32.mrf.mxu0 }
 0x7a6   :  { %v1853_v52 = vpop.f32.mrf.mxu1  ;;  %v1902_v13 = vpop.f32.mrf.mxu0 }
 0x7a7   :  { %v1903_v32 = vadd.f32 %v1902_v13, %v1850_v61 }
 0x7ae   :  { %v1873_v57 = vpop.f32.mrf.mxu1  ;;  %v1905_v40 = vpop.f32.mrf.mxu0 }
 0x7af   :  { %v1906_v27 = vadd.f32 %v1905_v40, %v1853_v52 }
 0x7b6   :  { %v1807_v48 = vpop.f32.mrf.mxu3  ;;  %v1876_v10 = vpop.f32.mrf.mxu1 }
 0x7b7   :  { %v1808_v49 = vadd.f32 %v1807_v48, %v1777_v41 }
 0x7b9   :  { %2307 = vmatmul.msk.f32.vlgmr.msra.gmra.mxu2 %vm105_vm0, %v1808_v49  ;;  %2309 = vmatmul.msk.f32.vlgmr.msrb.gmra.mxu3 %vm105_vm0, %v1808_v49  ;;  %v2081_v49 = vperm.slane %v3226_v12, 7 }
 0x7be   :  { %v1810_v14 = vpop.f32.mrf.mxu3  ;;  %v1925_v31 = vpop.f32.mrf.mxu1 }
 0x7bf   :  { %v1811_v60 = vadd.f32 %v1810_v14, %v1777_v41  ;;  %v1926_v15 = vadd.f32 %v1925_v31, %v1873_v57 }
 0x7c1   :  { %2308 = vmatmul.msk.f32.gmra.mxu2 %vm105_vm0, %v1811_v60  ;;  %2310 = vmatmul.msk.f32.gmra.mxu3 %vm105_vm0, %v1811_v60 }
 0x7c6   :  { %v1813_v62 = vpop.f32.mrf.mxu3  ;;  %v1928_v45 = vpop.f32.mrf.mxu1 }
 0x7c7   :  { %v1814_v1 = vadd.f32 %v1813_v62, %v1777_v41  ;;  %v1929_v30 = vadd.f32 %v1928_v45, %v1876_v10 }
 0x7c9   :  { %2311 = vmatmul.msk.f32.vlgmr.msrb.gmra.mxu0 %vm105_vm0, %v1814_v1  ;;  %2313 = vmatmul.msk.f32.vlgmr.msra.gmra.mxu1 %vm105_vm0, %v1814_v1 }
 0x7ce   :  { %v1816_v2 = vpop.f32.mrf.mxu3 }
 0x7cf   :  { %v1817_v3 = vadd.f32 %v1816_v2, %v1777_v41 }
 0x7d1   :  { %2312 = vmatmul.msk.f32.gmra.mxu0 %vm105_vm0, %v1817_v3  ;;  %2314 = vmatmul.msk.f32.gmra.mxu1 %vm105_vm0, %v1817_v3 }
 0x83c   :  { %v1958_v56 = vpop.f32.mrf.mxu2  ;;  %v1981_v51 = vpop.f32.mrf.mxu3 }
 0x83d   :  { %v1987_v17 = vadd.f32 %v1958_v56, %v1903_v32  ;;  %v1988_v21 = vadd.f32 %v1981_v51, %v1926_v15 }
 0x844   :  { %v1961_v23 = vpop.f32.mrf.mxu2  ;;  %v1984_v24 = vpop.f32.mrf.mxu3 }
 0x845   :  { %v1989_v35 = vadd.f32 %v1961_v23, %v1906_v27  ;;  %v1990_v36 = vadd.f32 %v1984_v24, %v1929_v30 }
 0x846   :  { %v2018_v0 = vpop.f32.mrf.mxu0  ;;  %v2041_v33 = vpop.f32.mrf.mxu1 }
 0x847   :  { %v2047_v44 = vadd.f32 %v2018_v0, %v1987_v17  ;;  %v2048_v63 = vadd.f32 %v2041_v33, %v1988_v21 }
 0x849   :  { %v2053_v16 = vadd.f32 %v2051_v25, %v2047_v44  ;;  %v2054_v19 = vadd.f32 %v2052_v29, %v2048_v63 }
 0x84b   :  { %v2057_v22 = vmax.f32 %v2053_v16, 0.0  ;;  %v2058_v34 = vmax.f32 %v2054_v19, 0.0 }
 0x84d   :  { %2104 = vmatmul.f32.vlgmr.msrb.gmra.mxu2 %v2057_v22  ;;  %2315 = vmatmul.msk.f32.vlgmr.msra.gmra.mxu3 %vm295_vm14, %v2058_v34 }
 0x84e   :  { %v2021_v37 = vpop.f32.mrf.mxu0  ;;  %v2044_v38 = vpop.f32.mrf.mxu1 }
 0x84f   :  { %v2049_v28 = vadd.f32 %v2021_v37, %v1989_v35  ;;  %v2050_v20 = vadd.f32 %v2044_v38, %v1990_v36 }
 0x851   :  { %v2055_v41 = vadd.f32 %v2051_v25, %v2049_v28  ;;  %v2056_v42 = vadd.f32 %v2052_v29, %v2050_v20 }
 0x853   :  { %v2059_v43 = vmax.f32 %v2055_v41, 0.0  ;;  %v2060_v48 = vmax.f32 %v2056_v42, 0.0 }
 0x855   :  { %2107 = vmatmul.f32.gmra.mxu2 %v2059_v43  ;;  %2316 = vmatmul.msk.f32.gmra.mxu3 %vm295_vm14, %v2060_v48 }
 0x8d0   :  { %v2105_v50 = vpop.f32.mrf.mxu2  ;;  %v2128_v58 = vpop.f32.mrf.mxu3 }
 0x8d1   :  { %v2106_v11 = vadd.f32 %v2105_v50, %v2081_v49 }
 0x8d3   :  { %v2129_v14 = vadd.f32 %v2128_v58, %v2106_v11 }
 0x8d5   :  { %v2134_v60 = vmax.f32 %v2129_v14, 0.0 }
 0x8d7   :  { %2317 = vmatmul.msk.f32.vlgmr.msra.gmra.mxu0 %vm105_vm0, %v2134_v60 }
 0x8d8   :  { %v2108_v62 = vpop.f32.mrf.mxu2  ;;  %v2131_v2 = vpop.f32.mrf.mxu3 }
 0x8d9   :  { %v2109_v1 = vadd.f32 %v2108_v62, %v2081_v49 }
 0x8db   :  { %v2132_v3 = vadd.f32 %v2131_v2, %v2109_v1 }
 0x8dd   :  { %v2135_v52 = vmax.f32 %v2132_v3, 0.0 }
 0x8df   :  { %2318 = vmatmul.msk.f32.gmra.mxu0 %vm105_vm0, %v2135_v52 }
 0x954   :  { %v2162_v59 = vpop.f32.mrf.mxu0 }
 0x955   :  { %v2163_v12 = vadd.f32 %v2372_v4, %v2162_v59 }
 0x957   :  { %2169 = vst.msk [vmem:[%s3513_s6] sm:$0xff] %vm2168_vm13, %v2163_v12 }
 0x95c   :  { %v2165_v47 = vpop.f32.mrf.mxu0 }
 0x95d   :  { %v2166_v5 = vadd.f32 %v2372_v4, %v2165_v47 }
 0x95f   :  { %2170 = vst.msk [vmem:[%s3513_s6 + $0x8] sm:$0xff] %vm2168_vm13, %v2166_v5 }

</bundles_post_ra>
